<compile_context>
chip_gen: v6e
topology: v6e:2x2x1
jax: 0.10.0
libtpu: 0.0.40
codegen_flags: <defaults>
</compile_context>

<pallas_src>
import jax
import jax.numpy as jnp
from jax.experimental import pallas as pl
from jax.experimental.pallas import tpu as pltpu

NEG_SLOPE = 0.01  # F.leaky_relu default negative_slope
LANE = 128

# ---- static hetero-graph metadata (compile-time constants for the kernel) ----
NODE_TYPES = ("material", "process")
# edge types as (src_type_idx, dst_type_idx); to_hetero replicates the SAGEConv
# per edge type and sums contributions sharing a destination node type.
EDGE_TYPES = ((0, 1), (1, 0), (0, 0))
PRED_T = 0  # prediction_node_type = 'material'


def _round_up(n, m):
    return ((n + m - 1) // m) * m


# --------------------------------------------------------------------------- #
# Kernel
# --------------------------------------------------------------------------- #
def _make_kernel(num_types, edge_types, pred_t):
    def kernel(feat_ref, emb_ref, w_in_ref, b_in_ref, adj_ref,
               w_l_ref, w_r_ref, b_ref, w_out_ref, b_out_ref,
               out_ref, x_scr, y_scr):
        l = pl.program_id(0)

        # ---- first grid step only: input projection  x0 = feat@W_in + b + emb
        @pl.when(l == 0)
        def _():
            for t in range(num_types):
                h0 = jnp.dot(feat_ref[t], w_in_ref[t],
                             preferred_element_type=jnp.float32)
                x_scr[t] = h0 + b_in_ref[t] + emb_ref[t]

        # ---- one hetero SAGE layer (this step's weights are block l) --------
        for t_dst in range(num_types):
            x_dst = x_scr[t_dst].astype(jnp.bfloat16)
            acc = None
            for e, (t_src, td) in enumerate(edge_types):
                if td != t_dst:
                    continue
                x_src = x_scr[t_src].astype(jnp.bfloat16)
                # mean neighbor aggregation == row-normalized adjacency matmul
                aggr = jnp.dot(adj_ref[e], x_src,
                               preferred_element_type=jnp.float32)
                term = (jnp.dot(aggr.astype(jnp.bfloat16), w_l_ref[0, e],
                                preferred_element_type=jnp.float32)
                        + jnp.dot(x_dst, w_r_ref[0, e],
                                  preferred_element_type=jnp.float32)
                        + b_ref[0, e])
                acc = term if acc is None else acc + term
            y_scr[t_dst] = jnp.where(acc > 0, acc, NEG_SLOPE * acc)

        # next layer reads the freshly computed activations (VMEM -> VMEM copy)
        for t in range(num_types):
            x_scr[t] = y_scr[t]

        # ---- last grid step only: output head on the prediction node type ---
        @pl.when(l == pl.num_programs(0) - 1)
        def _():
            h = jnp.dot(y_scr[pred_t].astype(jnp.bfloat16), w_out_ref[...],
                        preferred_element_type=jnp.float32)
            out_ref[...] = h + b_out_ref[...]

    return kernel


def hetero_sage_forward(feat_p, emb_p, w_in_p, b_in_p, adj_p,
                        w_l_p, w_r_p, b_p, w_out_p, b_out_p):
    """Single fused pallas_call over the whole model forward. grid=(L,) layers."""
    num_types, n_pad, _ = feat_p.shape
    num_l, num_e, h_pad, _ = w_l_p.shape
    o_pad = w_out_p.shape[1]

    def resident(shape):
        zeros = (0,) * len(shape)
        return pl.BlockSpec(shape, lambda l: zeros)

    kernel = _make_kernel(num_types, EDGE_TYPES, PRED_T)

    return pl.pallas_call(
        kernel,
        out_shape=jax.ShapeDtypeStruct((n_pad, o_pad), jnp.float32),
        grid=(num_l,),
        in_specs=[
            resident(feat_p.shape),
            resident(emb_p.shape),
            resident(w_in_p.shape),
            resident(b_in_p.shape),
            resident(adj_p.shape),
            pl.BlockSpec((1, num_e, h_pad, h_pad), lambda l: (l, 0, 0, 0)),
            pl.BlockSpec((1, num_e, h_pad, h_pad), lambda l: (l, 0, 0, 0)),
            pl.BlockSpec((1, num_e, 1, h_pad), lambda l: (l, 0, 0, 0)),
            resident(w_out_p.shape),
            resident(b_out_p.shape),
        ],
        out_specs=pl.BlockSpec((n_pad, o_pad), lambda l: (0, 0)),
        scratch_shapes=[
            pltpu.VMEM((num_types, n_pad, h_pad), jnp.float32),  # current acts
            pltpu.VMEM((num_types, n_pad, h_pad), jnp.float32),  # next acts
        ],
        compiler_params=pltpu.CompilerParams(
            dimension_semantics=("arbitrary",),  # layers are sequential
            vmem_limit_bytes=32 * 1024 * 1024,
        ),
    )(feat_p, emb_p, w_in_p, b_in_p, adj_p,
      w_l_p, w_r_p, b_p, w_out_p, b_out_p)


# --------------------------------------------------------------------------- #
# Plain-JAX glue: adjacency, parameter init, padding/packing, f32 reference
# --------------------------------------------------------------------------- #
def build_norm_adj(edge_index, n_pad):
    """Dense row-normalized adjacency for one edge type, implementing PyG
    'mean' aggregation: A[i, j] = multiplicity(j->i) / in_degree(i)."""
    src, dst = edge_index[0], edge_index[1]
    counts = jnp.zeros((n_pad, n_pad), jnp.float32).at[dst, src].add(1.0)
    deg = counts.sum(axis=1, keepdims=True)
    return counts / jnp.maximum(deg, 1.0)


def init_params(key, num_nodes, num_feats, hidden, out_ch, num_layers):
    """Deterministic synthetic init mirroring the module's parameter shapes.
    L = num_layers - 1 SAGE layers (conv1 + (num_layers-2) convs), each with
    per-edge-type lin_l (weight+bias) and lin_r (weight)."""
    num_l = num_layers - 1
    num_t = len(num_nodes)
    num_e = len(EDGE_TYPES)
    params = {}

    key, *ks = jax.random.split(key, num_t + 1)
    params["emb"] = [jax.random.normal(ks[t], (num_nodes[t], hidden), jnp.float32)
                     for t in range(num_t)]

    lins = []
    for t in range(num_t):
        if num_feats[t] > 0:
            key, k1, k2 = jax.random.split(key, 3)
            s = 1.0 / jnp.sqrt(jnp.float32(num_feats[t]))
            w = jax.random.uniform(k1, (num_feats[t], hidden), jnp.float32, -s, s)
            b = jax.random.uniform(k2, (hidden,), jnp.float32, -s, s)
            lins.append((w, b))
        else:
            lins.append(None)
    params["lin"] = lins

    s = 1.0 / jnp.sqrt(jnp.float32(hidden))
    sage = []
    for _ in range(num_l):
        per_edge = []
        for _ in range(num_e):
            key, k1, k2, k3 = jax.random.split(key, 4)
            w_l = jax.random.uniform(k1, (hidden, hidden), jnp.float32, -s, s)
            w_r = jax.random.uniform(k2, (hidden, hidden), jnp.float32, -s, s)
            b = jax.random.uniform(k3, (hidden,), jnp.float32, -s, s)
            per_edge.append((w_l, w_r, b))
        sage.append(per_edge)
    params["sage"] = sage

    key, k1, k2 = jax.random.split(key, 3)
    params["w_out"] = jax.random.uniform(k1, (hidden, out_ch), jnp.float32, -s, s)
    params["b_out"] = jax.random.uniform(k2, (out_ch,), jnp.float32, -s, s)
    return params


def pack_inputs(feats, params, adjs, num_nodes, num_feats, hidden, out_ch):
    """Pad node counts / feature dims to 128 and stack per-type / per-layer /
    per-edge-type operands into lane-dense slabs. MXU operands go to bf16."""
    num_t = len(num_nodes)
    num_e = len(EDGE_TYPES)
    num_l = len(params["sage"])
    n_pad = _round_up(max(num_nodes), LANE)
    f_pad = _round_up(max(max(num_feats), 1), LANE)
    h_pad = _round_up(hidden, LANE)
    o_pad = _round_up(out_ch, LANE)

    feat_p = jnp.zeros((num_t, n_pad, f_pad), jnp.float32)
    emb_p = jnp.zeros((num_t, n_pad, h_pad), jnp.float32)
    w_in_p = jnp.zeros((num_t, f_pad, h_pad), jnp.float32)
    b_in_p = jnp.zeros((num_t, 1, h_pad), jnp.float32)
    for t in range(num_t):
        emb_p = emb_p.at[t, :num_nodes[t], :hidden].set(params["emb"][t])
        if params["lin"][t] is not None:
            w, b = params["lin"][t]
            feat_p = feat_p.at[t, :num_nodes[t], :num_feats[t]].set(feats[t])
            w_in_p = w_in_p.at[t, :num_feats[t], :hidden].set(w)
            b_in_p = b_in_p.at[t, 0, :hidden].set(b)

    adj_p = jnp.stack(adjs)  # already built at (n_pad, n_pad)

    w_l_p = jnp.zeros((num_l, num_e, h_pad, h_pad), jnp.float32)
    w_r_p = jnp.zeros((num_l, num_e, h_pad, h_pad), jnp.float32)
    b_p = jnp.zeros((num_l, num_e, 1, h_pad), jnp.float32)
    for l in range(num_l):
        for e in range(num_e):
            w_l, w_r, b = params["sage"][l][e]
            w_l_p = w_l_p.at[l, e, :hidden, :hidden].set(w_l)
            w_r_p = w_r_p.at[l, e, :hidden, :hidden].set(w_r)
            b_p = b_p.at[l, e, 0, :hidden].set(b)

    w_out_p = jnp.zeros((h_pad, o_pad), jnp.float32).at[:hidden, :out_ch].set(params["w_out"])
    b_out_p = jnp.zeros((1, o_pad), jnp.float32).at[0, :out_ch].set(params["b_out"])

    return (feat_p.astype(jnp.bfloat16), emb_p, w_in_p.astype(jnp.bfloat16),
            b_in_p, adj_p.astype(jnp.bfloat16),
            w_l_p.astype(jnp.bfloat16), w_r_p.astype(jnp.bfloat16), b_p,
            w_out_p.astype(jnp.bfloat16), b_out_p)


def reference_forward(feats, params, adjs, num_nodes):
    """Pure-JAX f32 reference of the same forward (unpadded)."""
    num_t = len(num_nodes)
    x = []
    for t in range(num_t):
        h = params["emb"][t]
        if params["lin"][t] is not None:
            w, b = params["lin"][t]
            h = h + feats[t] @ w + b
        x.append(h)
    for per_edge in params["sage"]:
        new = [None] * num_t
        for t_dst in range(num_t):
            acc = None
            for e, (t_src, td) in enumerate(EDGE_TYPES):
                if td != t_dst:
                    continue
                w_l, w_r, b = per_edge[e]
                a = adjs[e][:num_nodes[t_dst], :num_nodes[t_src]]
                term = (a @ x[t_src]) @ w_l + x[t_dst] @ w_r + b
                acc = term if acc is None else acc + term
            new[t_dst] = jnp.where(acc > 0, acc, NEG_SLOPE * acc)
        x = new
    return x[PRED_T] @ params["w_out"] + params["b_out"]


# --------------------------------------------------------------------------- #
if __name__ == "__main__":
    key = jax.random.PRNGKey(0)

    num_nodes = (48, 40)     # material, process
    num_feats = (12, 0)      # 'process' has no node features (embedding only)
    hidden_channels = 32
    out_channels = 6
    num_layers = 3           # conv1 + (num_layers - 2) convs = 2 SAGE layers
    num_edges = (160, 120, 96)

    n_pad = _round_up(max(num_nodes), LANE)

    key, k_feat, k_params, *k_edges = jax.random.split(key, 3 + len(EDGE_TYPES))
    feats = [jax.random.normal(k_feat, (num_nodes[0], num_feats[0]), jnp.float32),
             None]

    adjs = []
    for e, (t_src, t_dst) in enumerate(EDGE_TYPES):
        ks, kd = jax.random.split(k_edges[e])
        src = jax.random.randint(ks, (num_edges[e],), 0, num_nodes[t_src])
        dst = jax.random.randint(kd, (num_edges[e],), 0, num_nodes[t_dst])
        adjs.append(build_norm_adj(jnp.stack([src, dst]), n_pad))

    params = init_params(k_params, num_nodes, num_feats, hidden_channels,
                         out_channels, num_layers)

    packed = pack_inputs(feats, params, adjs, num_nodes, num_feats,
                         hidden_channels, out_channels)

    out_padded = jax.block_until_ready(hetero_sage_forward(*packed))
    out = out_padded[:num_nodes[PRED_T], :out_channels]

    ref = reference_forward(feats, params, adjs, num_nodes)
    err = float(jnp.max(jnp.abs(out - ref)))

    assert out.shape == (num_nodes[PRED_T], out_channels), out.shape
    assert bool(jnp.all(jnp.isfinite(out)))
    assert err < 0.1, f"max abs error vs f32 reference: {err}"
    print("KERNEL_OK")
</pallas_src>

<mosaic_0001>
module attributes {stable_mosaic.version = 11 : i64} {
  func.func @kernel(%arg0: i32, %arg1: memref<2x128x128xbf16, #tpu.memory_space<vmem>>, %arg2: memref<2x128x128xf32, #tpu.memory_space<vmem>>, %arg3: memref<2x128x128xbf16, #tpu.memory_space<vmem>>, %arg4: memref<2x1x128xf32, #tpu.memory_space<vmem>>, %arg5: memref<3x128x128xbf16, #tpu.memory_space<vmem>>, %arg6: memref<1x3x128x128xbf16, #tpu.memory_space<vmem>>, %arg7: memref<1x3x128x128xbf16, #tpu.memory_space<vmem>>, %arg8: memref<1x3x1x128xf32, #tpu.memory_space<vmem>>, %arg9: memref<128x128xbf16, #tpu.memory_space<vmem>>, %arg10: memref<1x128xf32, #tpu.memory_space<vmem>>, %arg11: memref<128x128xf32, #tpu.memory_space<vmem>>, %arg12: memref<2x128x128xf32, #tpu.memory_space<vmem>>, %arg13: memref<2x128x128xf32, #tpu.memory_space<vmem>>) attributes {dimension_semantics = [#tpu.dimension_semantics<arbitrary>], iteration_bounds = array<i64: 2>, scalar_prefetch = 0 : i64, scratch_operands = 2 : i64, tpu.core_type = #tpu.core_type<tc>, window_params = [{pipeline_mode = #tpu.pipeline_mode<synchronous>, transform_indices = @transform_0, window_bounds = array<i64: 2, 128, 128>}, {pipeline_mode = #tpu.pipeline_mode<synchronous>, transform_indices = @transform_1, window_bounds = array<i64: 2, 128, 128>}, {pipeline_mode = #tpu.pipeline_mode<synchronous>, transform_indices = @transform_2, window_bounds = array<i64: 2, 128, 128>}, {pipeline_mode = #tpu.pipeline_mode<synchronous>, transform_indices = @transform_3, window_bounds = array<i64: 2, 1, 128>}, {pipeline_mode = #tpu.pipeline_mode<synchronous>, transform_indices = @transform_4, window_bounds = array<i64: 3, 128, 128>}, {transform_indices = @transform_5, window_bounds = array<i64: 1, 3, 128, 128>}, {transform_indices = @transform_6, window_bounds = array<i64: 1, 3, 128, 128>}, {transform_indices = @transform_7, window_bounds = array<i64: 1, 3, 1, 128>}, {pipeline_mode = #tpu.pipeline_mode<synchronous>, transform_indices = @transform_8, window_bounds = array<i64: 128, 128>}, {pipeline_mode = #tpu.pipeline_mode<synchronous>, transform_indices = @transform_9, window_bounds = array<i64: 1, 128>}, {pipeline_mode = #tpu.pipeline_mode<synchronous>, transform_indices = @transform_10, window_bounds = array<i64: 128, 128>}]} {
    %c0_i32 = arith.constant 0 : i32
    %0 = arith.cmpi eq, %arg0, %c0_i32 : i32
    %1 = arith.extui %0 : i1 to i32
    %c0_i32_0 = arith.constant 0 : i32
    %2 = arith.cmpi ne, %1, %c0_i32_0 : i32
    scf.if %2 {
      %c0_89 = arith.constant 0 : index
      %c0_90 = arith.constant 0 : index
      %c0_91 = arith.constant 0 : index
      %93 = vector.load %arg1[%c0_89, %c0_90, %c0_91] : memref<2x128x128xbf16, #tpu.memory_space<vmem>>, vector<1x128x128xbf16>
      %94 = vector.shape_cast %93 : vector<1x128x128xbf16> to vector<128x128xbf16>
      %c0_92 = arith.constant 0 : index
      %c0_93 = arith.constant 0 : index
      %c0_94 = arith.constant 0 : index
      %95 = vector.load %arg3[%c0_92, %c0_93, %c0_94] : memref<2x128x128xbf16, #tpu.memory_space<vmem>>, vector<1x128x128xbf16>
      %96 = vector.shape_cast %95 : vector<1x128x128xbf16> to vector<128x128xbf16>
      %cst_95 = arith.constant dense<0.000000e+00> : vector<128x128xf32>
      %97 = tpu.matmul %94, %96, %cst_95 {dimension_numbers = #tpu.dot_dimension_numbers<[1], [0], [0], [1], [0, 0, 1, 1], [], []>} : vector<128x128xbf16>, vector<128x128xbf16>, vector<128x128xf32> -> vector<128x128xf32>
      %c0_96 = arith.constant 0 : index
      %c0_97 = arith.constant 0 : index
      %c0_98 = arith.constant 0 : index
      %98 = vector.load %arg4[%c0_96, %c0_97, %c0_98] : memref<2x1x128xf32, #tpu.memory_space<vmem>>, vector<1x1x128xf32>
      %99 = vector.shape_cast %98 : vector<1x1x128xf32> to vector<1x128xf32>
      %100 = vector.broadcast %99 : vector<1x128xf32> to vector<128x128xf32>
      %101 = arith.addf %97, %100 : vector<128x128xf32>
      %c0_99 = arith.constant 0 : index
      %c0_100 = arith.constant 0 : index
      %c0_101 = arith.constant 0 : index
      %102 = vector.load %arg2[%c0_99, %c0_100, %c0_101] : memref<2x128x128xf32, #tpu.memory_space<vmem>>, vector<1x128x128xf32>
      %103 = vector.shape_cast %102 : vector<1x128x128xf32> to vector<128x128xf32>
      %104 = arith.addf %101, %103 : vector<128x128xf32>
      %c0_102 = arith.constant 0 : index
      %c0_103 = arith.constant 0 : index
      %c0_104 = arith.constant 0 : index
      %105 = vector.load %arg12[%c0_102, %c0_103, %c0_104] : memref<2x128x128xf32, #tpu.memory_space<vmem>>, vector<1x128x128xf32>
      %106 = vector.shape_cast %105 : vector<1x128x128xf32> to vector<128x128xf32>
      %107 = vector.shape_cast %104 : vector<128x128xf32> to vector<1x128x128xf32>
      tpu.vector_store %arg12[%c0_102, %c0_103, %c0_104], %107 {strides = array<i32>} : memref<2x128x128xf32, #tpu.memory_space<vmem>>, vector<1x128x128xf32>,
      %c1_105 = arith.constant 1 : index
      %c0_106 = arith.constant 0 : index
      %c0_107 = arith.constant 0 : index
      %108 = vector.load %arg1[%c1_105, %c0_106, %c0_107] : memref<2x128x128xbf16, #tpu.memory_space<vmem>>, vector<1x128x128xbf16>
      %109 = vector.shape_cast %108 : vector<1x128x128xbf16> to vector<128x128xbf16>
      %c1_108 = arith.constant 1 : index
      %c0_109 = arith.constant 0 : index
      %c0_110 = arith.constant 0 : index
      %110 = vector.load %arg3[%c1_108, %c0_109, %c0_110] : memref<2x128x128xbf16, #tpu.memory_space<vmem>>, vector<1x128x128xbf16>
      %111 = vector.shape_cast %110 : vector<1x128x128xbf16> to vector<128x128xbf16>
      %cst_111 = arith.constant dense<0.000000e+00> : vector<128x128xf32>
      %112 = tpu.matmul %109, %111, %cst_111 {dimension_numbers = #tpu.dot_dimension_numbers<[1], [0], [0], [1], [0, 0, 1, 1], [], []>} : vector<128x128xbf16>, vector<128x128xbf16>, vector<128x128xf32> -> vector<128x128xf32>
      %c1_112 = arith.constant 1 : index
      %c0_113 = arith.constant 0 : index
      %c0_114 = arith.constant 0 : index
      %113 = vector.load %arg4[%c1_112, %c0_113, %c0_114] : memref<2x1x128xf32, #tpu.memory_space<vmem>>, vector<1x1x128xf32>
      %114 = vector.shape_cast %113 : vector<1x1x128xf32> to vector<1x128xf32>
      %115 = vector.broadcast %114 : vector<1x128xf32> to vector<128x128xf32>
      %116 = arith.addf %112, %115 : vector<128x128xf32>
      %c1_115 = arith.constant 1 : index
      %c0_116 = arith.constant 0 : index
      %c0_117 = arith.constant 0 : index
      %117 = vector.load %arg2[%c1_115, %c0_116, %c0_117] : memref<2x128x128xf32, #tpu.memory_space<vmem>>, vector<1x128x128xf32>
      %118 = vector.shape_cast %117 : vector<1x128x128xf32> to vector<128x128xf32>
      %119 = arith.addf %116, %118 : vector<128x128xf32>
      %c1_118 = arith.constant 1 : index
      %c0_119 = arith.constant 0 : index
      %c0_120 = arith.constant 0 : index
      %120 = vector.load %arg12[%c1_118, %c0_119, %c0_120] : memref<2x128x128xf32, #tpu.memory_space<vmem>>, vector<1x128x128xf32>
      %121 = vector.shape_cast %120 : vector<1x128x128xf32> to vector<128x128xf32>
      %122 = vector.shape_cast %119 : vector<128x128xf32> to vector<1x128x128xf32>
      tpu.vector_store %arg12[%c1_118, %c0_119, %c0_120], %122 {strides = array<i32>} : memref<2x128x128xf32, #tpu.memory_space<vmem>>, vector<1x128x128xf32>,
    } else {
    }
    %c0 = arith.constant 0 : index
    %c0_1 = arith.constant 0 : index
    %c0_2 = arith.constant 0 : index
    %3 = vector.load %arg12[%c0, %c0_1, %c0_2] : memref<2x128x128xf32, #tpu.memory_space<vmem>>, vector<1x128x128xf32>
    %4 = vector.shape_cast %3 : vector<1x128x128xf32> to vector<128x128xf32>
    %5 = arith.truncf %4 : vector<128x128xf32> to vector<128x128xbf16>
    %c1 = arith.constant 1 : index
    %c0_3 = arith.constant 0 : index
    %c0_4 = arith.constant 0 : index
    %6 = vector.load %arg12[%c1, %c0_3, %c0_4] : memref<2x128x128xf32, #tpu.memory_space<vmem>>, vector<1x128x128xf32>
    %7 = vector.shape_cast %6 : vector<1x128x128xf32> to vector<128x128xf32>
    %8 = arith.truncf %7 : vector<128x128xf32> to vector<128x128xbf16>
    %c1_5 = arith.constant 1 : index
    %c0_6 = arith.constant 0 : index
    %c0_7 = arith.constant 0 : index
    %9 = vector.load %arg5[%c1_5, %c0_6, %c0_7] : memref<3x128x128xbf16, #tpu.memory_space<vmem>>, vector<1x128x128xbf16>
    %10 = vector.shape_cast %9 : vector<1x128x128xbf16> to vector<128x128xbf16>
    %cst = arith.constant dense<0.000000e+00> : vector<128x128xf32>
    %11 = tpu.matmul %10, %8, %cst {dimension_numbers = #tpu.dot_dimension_numbers<[1], [0], [0], [1], [0, 0, 1, 1], [], []>} : vector<128x128xbf16>, vector<128x128xbf16>, vector<128x128xf32> -> vector<128x128xf32>
    %12 = arith.truncf %11 : vector<128x128xf32> to vector<128x128xbf16>
    %c0_8 = arith.constant 0 : index
    %c1_9 = arith.constant 1 : index
    %c0_10 = arith.constant 0 : index
    %c0_11 = arith.constant 0 : index
    %13 = vector.load %arg6[%c0_8, %c1_9, %c0_10, %c0_11] : memref<1x3x128x128xbf16, #tpu.memory_space<vmem>>, vector<1x1x128x128xbf16>
    %14 = vector.shape_cast %13 : vector<1x1x128x128xbf16> to vector<128x128xbf16>
    %cst_12 = arith.constant dense<0.000000e+00> : vector<128x128xf32>
    %15 = tpu.matmul %12, %14, %cst_12 {dimension_numbers = #tpu.dot_dimension_numbers<[1], [0], [0], [1], [0, 0, 1, 1], [], []>} : vector<128x128xbf16>, vector<128x128xbf16>, vector<128x128xf32> -> vector<128x128xf32>
    %c0_13 = arith.constant 0 : index
    %c1_14 = arith.constant 1 : index
    %c0_15 = arith.constant 0 : index
    %c0_16 = arith.constant 0 : index
    %16 = vector.load %arg7[%c0_13, %c1_14, %c0_15, %c0_16] : memref<1x3x128x128xbf16, #tpu.memory_space<vmem>>, vector<1x1x128x128xbf16>
    %17 = vector.shape_cast %16 : vector<1x1x128x128xbf16> to vector<128x128xbf16>
    %cst_17 = arith.constant dense<0.000000e+00> : vector<128x128xf32>
    %18 = tpu.matmul %5, %17, %cst_17 {dimension_numbers = #tpu.dot_dimension_numbers<[1], [0], [0], [1], [0, 0, 1, 1], [], []>} : vector<128x128xbf16>, vector<128x128xbf16>, vector<128x128xf32> -> vector<128x128xf32>
    %19 = arith.addf %15, %18 : vector<128x128xf32>
    %c0_18 = arith.constant 0 : index
    %c1_19 = arith.constant 1 : index
    %c0_20 = arith.constant 0 : index
    %c0_21 = arith.constant 0 : index
    %20 = vector.load %arg8[%c0_18, %c1_19, %c0_20, %c0_21] : memref<1x3x1x128xf32, #tpu.memory_space<vmem>>, vector<1x1x1x128xf32>
    %21 = vector.shape_cast %20 : vector<1x1x1x128xf32> to vector<1x128xf32>
    %22 = vector.broadcast %21 : vector<1x128xf32> to vector<128x128xf32>
    %23 = arith.addf %19, %22 : vector<128x128xf32>
    %c0_22 = arith.constant 0 : index
    %c0_23 = arith.constant 0 : index
    %c0_24 = arith.constant 0 : index
    %24 = vector.load %arg12[%c0_22, %c0_23, %c0_24] : memref<2x128x128xf32, #tpu.memory_space<vmem>>, vector<1x128x128xf32>
    %25 = vector.shape_cast %24 : vector<1x128x128xf32> to vector<128x128xf32>
    %26 = arith.truncf %25 : vector<128x128xf32> to vector<128x128xbf16>
    %c2 = arith.constant 2 : index
    %c0_25 = arith.constant 0 : index
    %c0_26 = arith.constant 0 : index
    %27 = vector.load %arg5[%c2, %c0_25, %c0_26] : memref<3x128x128xbf16, #tpu.memory_space<vmem>>, vector<1x128x128xbf16>
    %28 = vector.shape_cast %27 : vector<1x128x128xbf16> to vector<128x128xbf16>
    %cst_27 = arith.constant dense<0.000000e+00> : vector<128x128xf32>
    %29 = tpu.matmul %28, %26, %cst_27 {dimension_numbers = #tpu.dot_dimension_numbers<[1], [0], [0], [1], [0, 0, 1, 1], [], []>} : vector<128x128xbf16>, vector<128x128xbf16>, vector<128x128xf32> -> vector<128x128xf32>
    %30 = arith.truncf %29 : vector<128x128xf32> to vector<128x128xbf16>
    %c0_28 = arith.constant 0 : index
    %c2_29 = arith.constant 2 : index
    %c0_30 = arith.constant 0 : index
    %c0_31 = arith.constant 0 : index
    %31 = vector.load %arg6[%c0_28, %c2_29, %c0_30, %c0_31] : memref<1x3x128x128xbf16, #tpu.memory_space<vmem>>, vector<1x1x128x128xbf16>
    %32 = vector.shape_cast %31 : vector<1x1x128x128xbf16> to vector<128x128xbf16>
    %cst_32 = arith.constant dense<0.000000e+00> : vector<128x128xf32>
    %33 = tpu.matmul %30, %32, %cst_32 {dimension_numbers = #tpu.dot_dimension_numbers<[1], [0], [0], [1], [0, 0, 1, 1], [], []>} : vector<128x128xbf16>, vector<128x128xbf16>, vector<128x128xf32> -> vector<128x128xf32>
    %c0_33 = arith.constant 0 : index
    %c2_34 = arith.constant 2 : index
    %c0_35 = arith.constant 0 : index
    %c0_36 = arith.constant 0 : index
    %34 = vector.load %arg7[%c0_33, %c2_34, %c0_35, %c0_36] : memref<1x3x128x128xbf16, #tpu.memory_space<vmem>>, vector<1x1x128x128xbf16>
    %35 = vector.shape_cast %34 : vector<1x1x128x128xbf16> to vector<128x128xbf16>
    %cst_37 = arith.constant dense<0.000000e+00> : vector<128x128xf32>
    %36 = tpu.matmul %5, %35, %cst_37 {dimension_numbers = #tpu.dot_dimension_numbers<[1], [0], [0], [1], [0, 0, 1, 1], [], []>} : vector<128x128xbf16>, vector<128x128xbf16>, vector<128x128xf32> -> vector<128x128xf32>
    %37 = arith.addf %33, %36 : vector<128x128xf32>
    %c0_38 = arith.constant 0 : index
    %c2_39 = arith.constant 2 : index
    %c0_40 = arith.constant 0 : index
    %c0_41 = arith.constant 0 : index
    %38 = vector.load %arg8[%c0_38, %c2_39, %c0_40, %c0_41] : memref<1x3x1x128xf32, #tpu.memory_space<vmem>>, vector<1x1x1x128xf32>
    %39 = vector.shape_cast %38 : vector<1x1x1x128xf32> to vector<1x128xf32>
    %40 = vector.broadcast %39 : vector<1x128xf32> to vector<128x128xf32>
    %41 = arith.addf %37, %40 : vector<128x128xf32>
    %42 = arith.addf %23, %41 : vector<128x128xf32>
    %cst_42 = arith.constant 0.000000e+00 : f32
    %43 = vector.broadcast %cst_42 : f32 to vector<128x128xf32>
    %44 = arith.cmpf ogt, %42, %43 : vector<128x128xf32>
    %cst_43 = arith.constant 0.00999999977 : f32
    %45 = vector.broadcast %cst_43 : f32 to vector<128x128xf32>
    %46 = arith.mulf %45, %42 : vector<128x128xf32>
    %47 = arith.select %44, %42, %46 : vector<128x128xi1>, vector<128x128xf32>
    %c0_44 = arith.constant 0 : index
    %c0_45 = arith.constant 0 : index
    %c0_46 = arith.constant 0 : index
    %48 = vector.load %arg13[%c0_44, %c0_45, %c0_46] : memref<2x128x128xf32, #tpu.memory_space<vmem>>, vector<1x128x128xf32>
    %49 = vector.shape_cast %48 : vector<1x128x128xf32> to vector<128x128xf32>
    %50 = vector.shape_cast %47 : vector<128x128xf32> to vector<1x128x128xf32>
    tpu.vector_store %arg13[%c0_44, %c0_45, %c0_46], %50 {strides = array<i32>} : memref<2x128x128xf32, #tpu.memory_space<vmem>>, vector<1x128x128xf32>,
    %c1_47 = arith.constant 1 : index
    %c0_48 = arith.constant 0 : index
    %c0_49 = arith.constant 0 : index
    %51 = vector.load %arg12[%c1_47, %c0_48, %c0_49] : memref<2x128x128xf32, #tpu.memory_space<vmem>>, vector<1x128x128xf32>
    %52 = vector.shape_cast %51 : vector<1x128x128xf32> to vector<128x128xf32>
    %53 = arith.truncf %52 : vector<128x128xf32> to vector<128x128xbf16>
    %c0_50 = arith.constant 0 : index
    %c0_51 = arith.constant 0 : index
    %c0_52 = arith.constant 0 : index
    %54 = vector.load %arg12[%c0_50, %c0_51, %c0_52] : memref<2x128x128xf32, #tpu.memory_space<vmem>>, vector<1x128x128xf32>
    %55 = vector.shape_cast %54 : vector<1x128x128xf32> to vector<128x128xf32>
    %56 = arith.truncf %55 : vector<128x128xf32> to vector<128x128xbf16>
    %c0_53 = arith.constant 0 : index
    %c0_54 = arith.constant 0 : index
    %c0_55 = arith.constant 0 : index
    %57 = vector.load %arg5[%c0_53, %c0_54, %c0_55] : memref<3x128x128xbf16, #tpu.memory_space<vmem>>, vector<1x128x128xbf16>
    %58 = vector.shape_cast %57 : vector<1x128x128xbf16> to vector<128x128xbf16>
    %cst_56 = arith.constant dense<0.000000e+00> : vector<128x128xf32>
    %59 = tpu.matmul %58, %56, %cst_56 {dimension_numbers = #tpu.dot_dimension_numbers<[1], [0], [0], [1], [0, 0, 1, 1], [], []>} : vector<128x128xbf16>, vector<128x128xbf16>, vector<128x128xf32> -> vector<128x128xf32>
    %60 = arith.truncf %59 : vector<128x128xf32> to vector<128x128xbf16>
    %c0_57 = arith.constant 0 : index
    %c0_58 = arith.constant 0 : index
    %c0_59 = arith.constant 0 : index
    %c0_60 = arith.constant 0 : index
    %61 = vector.load %arg6[%c0_57, %c0_58, %c0_59, %c0_60] : memref<1x3x128x128xbf16, #tpu.memory_space<vmem>>, vector<1x1x128x128xbf16>
    %62 = vector.shape_cast %61 : vector<1x1x128x128xbf16> to vector<128x128xbf16>
    %cst_61 = arith.constant dense<0.000000e+00> : vector<128x128xf32>
    %63 = tpu.matmul %60, %62, %cst_61 {dimension_numbers = #tpu.dot_dimension_numbers<[1], [0], [0], [1], [0, 0, 1, 1], [], []>} : vector<128x128xbf16>, vector<128x128xbf16>, vector<128x128xf32> -> vector<128x128xf32>
    %c0_62 = arith.constant 0 : index
    %c0_63 = arith.constant 0 : index
    %c0_64 = arith.constant 0 : index
    %c0_65 = arith.constant 0 : index
    %64 = vector.load %arg7[%c0_62, %c0_63, %c0_64, %c0_65] : memref<1x3x128x128xbf16, #tpu.memory_space<vmem>>, vector<1x1x128x128xbf16>
    %65 = vector.shape_cast %64 : vector<1x1x128x128xbf16> to vector<128x128xbf16>
    %cst_66 = arith.constant dense<0.000000e+00> : vector<128x128xf32>
    %66 = tpu.matmul %53, %65, %cst_66 {dimension_numbers = #tpu.dot_dimension_numbers<[1], [0], [0], [1], [0, 0, 1, 1], [], []>} : vector<128x128xbf16>, vector<128x128xbf16>, vector<128x128xf32> -> vector<128x128xf32>
    %67 = arith.addf %63, %66 : vector<128x128xf32>
    %c0_67 = arith.constant 0 : index
    %c0_68 = arith.constant 0 : index
    %c0_69 = arith.constant 0 : index
    %c0_70 = arith.constant 0 : index
    %68 = vector.load %arg8[%c0_67, %c0_68, %c0_69, %c0_70] : memref<1x3x1x128xf32, #tpu.memory_space<vmem>>, vector<1x1x1x128xf32>
    %69 = vector.shape_cast %68 : vector<1x1x1x128xf32> to vector<1x128xf32>
    %70 = vector.broadcast %69 : vector<1x128xf32> to vector<128x128xf32>
    %71 = arith.addf %67, %70 : vector<128x128xf32>
    %cst_71 = arith.constant 0.000000e+00 : f32
    %72 = vector.broadcast %cst_71 : f32 to vector<128x128xf32>
    %73 = arith.cmpf ogt, %71, %72 : vector<128x128xf32>
    %cst_72 = arith.constant 0.00999999977 : f32
    %74 = vector.broadcast %cst_72 : f32 to vector<128x128xf32>
    %75 = arith.mulf %74, %71 : vector<128x128xf32>
    %76 = arith.select %73, %71, %75 : vector<128x128xi1>, vector<128x128xf32>
    %c1_73 = arith.constant 1 : index
    %c0_74 = arith.constant 0 : index
    %c0_75 = arith.constant 0 : index
    %77 = vector.load %arg13[%c1_73, %c0_74, %c0_75] : memref<2x128x128xf32, #tpu.memory_space<vmem>>, vector<1x128x128xf32>
    %78 = vector.shape_cast %77 : vector<1x128x128xf32> to vector<128x128xf32>
    %79 = vector.shape_cast %76 : vector<128x128xf32> to vector<1x128x128xf32>
    tpu.vector_store %arg13[%c1_73, %c0_74, %c0_75], %79 {strides = array<i32>} : memref<2x128x128xf32, #tpu.memory_space<vmem>>, vector<1x128x128xf32>,
    %c0_76 = arith.constant 0 : index
    %c0_77 = arith.constant 0 : index
    %c0_78 = arith.constant 0 : index
    %80 = vector.load %arg13[%c0_76, %c0_77, %c0_78] : memref<2x128x128xf32, #tpu.memory_space<vmem>>, vector<1x128x128xf32>
    %81 = vector.shape_cast %80 : vector<1x128x128xf32> to vector<128x128xf32>
    %c0_79 = arith.constant 0 : index
    %c0_80 = arith.constant 0 : index
    %c0_81 = arith.constant 0 : index
    %82 = vector.load %arg12[%c0_79, %c0_80, %c0_81] : memref<2x128x128xf32, #tpu.memory_space<vmem>>, vector<1x128x128xf32>
    %83 = vector.shape_cast %82 : vector<1x128x128xf32> to vector<128x128xf32>
    %84 = vector.shape_cast %81 : vector<128x128xf32> to vector<1x128x128xf32>
    tpu.vector_store %arg12[%c0_79, %c0_80, %c0_81], %84 {strides = array<i32>} : memref<2x128x128xf32, #tpu.memory_space<vmem>>, vector<1x128x128xf32>,
    %c1_82 = arith.constant 1 : index
    %c0_83 = arith.constant 0 : index
    %c0_84 = arith.constant 0 : index
    %85 = vector.load %arg13[%c1_82, %c0_83, %c0_84] : memref<2x128x128xf32, #tpu.memory_space<vmem>>, vector<1x128x128xf32>
    %86 = vector.shape_cast %85 : vector<1x128x128xf32> to vector<128x128xf32>
    %c1_85 = arith.constant 1 : index
    %c0_86 = arith.constant 0 : index
    %c0_87 = arith.constant 0 : index
    %87 = vector.load %arg12[%c1_85, %c0_86, %c0_87] : memref<2x128x128xf32, #tpu.memory_space<vmem>>, vector<1x128x128xf32>
    %88 = vector.shape_cast %87 : vector<1x128x128xf32> to vector<128x128xf32>
    %89 = vector.shape_cast %86 : vector<128x128xf32> to vector<1x128x128xf32>
    tpu.vector_store %arg12[%c1_85, %c0_86, %c0_87], %89 {strides = array<i32>} : memref<2x128x128xf32, #tpu.memory_space<vmem>>, vector<1x128x128xf32>,
    %c1_i32 = arith.constant 1 : i32
    %90 = arith.cmpi eq, %arg0, %c1_i32 : i32
    %91 = arith.extui %90 : i1 to i32
    %c0_i32_88 = arith.constant 0 : i32
    %92 = arith.cmpi ne, %91, %c0_i32_88 : i32
    scf.if %92 {
      %c0_89 = arith.constant 0 : index
      %c0_90 = arith.constant 0 : index
      %c0_91 = arith.constant 0 : index
      %93 = vector.load %arg13[%c0_89, %c0_90, %c0_91] : memref<2x128x128xf32, #tpu.memory_space<vmem>>, vector<1x128x128xf32>
      %94 = vector.shape_cast %93 : vector<1x128x128xf32> to vector<128x128xf32>
      %95 = arith.truncf %94 : vector<128x128xf32> to vector<128x128xbf16>
      %c0_92 = arith.constant 0 : index
      %c0_93 = arith.constant 0 : index
      %96 = vector.load %arg9[%c0_92, %c0_93] : memref<128x128xbf16, #tpu.memory_space<vmem>>, vector<128x128xbf16>
      %cst_94 = arith.constant dense<0.000000e+00> : vector<128x128xf32>
      %97 = tpu.matmul %95, %96, %cst_94 {dimension_numbers = #tpu.dot_dimension_numbers<[1], [0], [0], [1], [0, 0, 1, 1], [], []>} : vector<128x128xbf16>, vector<128x128xbf16>, vector<128x128xf32> -> vector<128x128xf32>
      %c0_95 = arith.constant 0 : index
      %c0_96 = arith.constant 0 : index
      %98 = vector.load %arg10[%c0_95, %c0_96] : memref<1x128xf32, #tpu.memory_space<vmem>>, vector<1x128xf32>
      %99 = vector.broadcast %98 : vector<1x128xf32> to vector<128x128xf32>
      %100 = arith.addf %97, %99 : vector<128x128xf32>
      %c0_97 = arith.constant 0 : index
      %c0_98 = arith.constant 0 : index
      %101 = vector.load %arg11[%c0_97, %c0_98] : memref<128x128xf32, #tpu.memory_space<vmem>>, vector<128x128xf32>
      tpu.vector_store %arg11[%c0_97, %c0_98], %100 {strides = array<i32>} : memref<128x128xf32, #tpu.memory_space<vmem>>, vector<128x128xf32>,
    } else {
    }
    return
  }
  func.func @transform_0(%arg0: i32) -> (i32, i32, i32) {
    %c0_i32 = arith.constant 0 : i32
    %c0_i32_0 = arith.constant 0 : i32
    %c0_i32_1 = arith.constant 0 : i32
    %c0_i32_2 = arith.constant 0 : i32
    return %c0_i32, %c0_i32_0, %c0_i32_1 : i32, i32, i32
  }
  func.func @transform_1(%arg0: i32) -> (i32, i32, i32) {
    %c0_i32 = arith.constant 0 : i32
    %c0_i32_0 = arith.constant 0 : i32
    %c0_i32_1 = arith.constant 0 : i32
    %c0_i32_2 = arith.constant 0 : i32
    return %c0_i32, %c0_i32_0, %c0_i32_1 : i32, i32, i32
  }
  func.func @transform_2(%arg0: i32) -> (i32, i32, i32) {
    %c0_i32 = arith.constant 0 : i32
    %c0_i32_0 = arith.constant 0 : i32
    %c0_i32_1 = arith.constant 0 : i32
    %c0_i32_2 = arith.constant 0 : i32
    return %c0_i32, %c0_i32_0, %c0_i32_1 : i32, i32, i32
  }
  func.func @transform_3(%arg0: i32) -> (i32, i32, i32) {
    %c0_i32 = arith.constant 0 : i32
    %c0_i32_0 = arith.constant 0 : i32
    %c0_i32_1 = arith.constant 0 : i32
    %c0_i32_2 = arith.constant 0 : i32
    return %c0_i32, %c0_i32_0, %c0_i32_1 : i32, i32, i32
  }
  func.func @transform_4(%arg0: i32) -> (i32, i32, i32) {
    %c0_i32 = arith.constant 0 : i32
    %c0_i32_0 = arith.constant 0 : i32
    %c0_i32_1 = arith.constant 0 : i32
    %c0_i32_2 = arith.constant 0 : i32
    return %c0_i32, %c0_i32_0, %c0_i32_1 : i32, i32, i32
  }
  func.func @transform_5(%arg0: i32) -> (i32, i32, i32, i32) {
    %c0_i32 = arith.constant 0 : i32
    %c0_i32_0 = arith.constant 0 : i32
    %c0_i32_1 = arith.constant 0 : i32
    %c0_i32_2 = arith.constant 0 : i32
    return %arg0, %c0_i32, %c0_i32_0, %c0_i32_1 : i32, i32, i32, i32
  }
  func.func @transform_6(%arg0: i32) -> (i32, i32, i32, i32) {
    %c0_i32 = arith.constant 0 : i32
    %c0_i32_0 = arith.constant 0 : i32
    %c0_i32_1 = arith.constant 0 : i32
    %c0_i32_2 = arith.constant 0 : i32
    return %arg0, %c0_i32, %c0_i32_0, %c0_i32_1 : i32, i32, i32, i32
  }
  func.func @transform_7(%arg0: i32) -> (i32, i32, i32, i32) {
    %c0_i32 = arith.constant 0 : i32
    %c0_i32_0 = arith.constant 0 : i32
    %c0_i32_1 = arith.constant 0 : i32
    %c0_i32_2 = arith.constant 0 : i32
    return %arg0, %c0_i32, %c0_i32_0, %c0_i32_1 : i32, i32, i32, i32
  }
  func.func @transform_8(%arg0: i32) -> (i32, i32) {
    %c0_i32 = arith.constant 0 : i32
    %c0_i32_0 = arith.constant 0 : i32
    %c0_i32_1 = arith.constant 0 : i32
    return %c0_i32, %c0_i32_0 : i32, i32
  }
  func.func @transform_9(%arg0: i32) -> (i32, i32) {
    %c0_i32 = arith.constant 0 : i32
    %c0_i32_0 = arith.constant 0 : i32
    %c0_i32_1 = arith.constant 0 : i32
    return %c0_i32, %c0_i32_0 : i32, i32
  }
  func.func @transform_10(%arg0: i32) -> (i32, i32) {
    %c0_i32 = arith.constant 0 : i32
    %c0_i32_0 = arith.constant 0 : i32
    %c0_i32_1 = arith.constant 0 : i32
    return %c0_i32, %c0_i32_0 : i32, i32
  }
}

</mosaic_0001>

<bundles_post_ra>
// kernel: tpu_custom_call.1
= control target key start
LH: loop header
LB: loop body
LE: loop exit
PB: predicated region body
PF: predicated region fallthrough
CT: control target
= control target key end

     0   :  { %s5201_s0 = inlined_call_operand.hbm [shape: bf16[2,128,128], index: 0, kind: input, shape index: {}]   ;;  %s5202_s1 = inlined_call_operand.hbm [shape: f32[2,128,128], index: 1, kind: input, shape index: {}]   ;;  %s5203_s2 = inlined_call_operand.hbm [shape: bf16[2,128,128], index: 2, kind: input, shape index: {}]   ;;  %s5204_s3 = inlined_call_operand.vmem [shape: f32[2,1,128], index: 3, kind: input, shape index: {}]   ;;  %s5205_s4 = inlined_call_operand.hbm [shape: bf16[3,128,128], index: 4, kind: input, shape index: {}]   ;;  %s5206_s5 = inlined_call_operand.hbm [shape: bf16[2,3,128,128], index: 5, kind: input, shape index: {}]   ;;  %s5207_s6 = inlined_call_operand.hbm [shape: bf16[2,3,128,128], index: 6, kind: input, shape index: {}]   ;;  %s5208_s7 = inlined_call_operand.vmem [shape: f32[2,3,1,128], index: 7, kind: input, shape index: {}]   ;;  %s5209_s8 = inlined_call_operand.hbm [shape: bf16[128,128], index: 8, kind: input, shape index: {}]   ;;  %s5210_s9 = inlined_call_operand.vmem [shape: f32[1,128], index: 9, kind: input, shape index: {}]   ;;  %s5211_s10 = inlined_call_operand.hbm [shape: f32[128,128], index: 10, kind: output, shape index: {}]  }
   0x1   :  { %5222 = sst [smem:[#allocation23_spill]] %s5201_s0 }
   0x2   :  { %5223 = sst [smem:[#allocation24_spill]] %s5202_s1 }
   0x3   :  { %5224 = sst [smem:[#allocation25_spill]] %s5203_s2 }
   0x4   :  { %5225 = sst [smem:[#allocation26_spill]] %s5206_s5 }
   0x5   :  { %15 = vsyncpa [#allocation5], 0 }
   0x6   :  { %16 = vsyncpa [#allocation8], 0 }
   0x7   :  { %17 = vsyncpa [#allocation11], 0 }
   0x8   :  { %18 = vsyncpa [#allocation6], 0  ;;  %s4642_s13 = smov 0   ;;  %s4644_s14 = smov 0  }
   0x9   :  { %s4646_s15 = smov 0   ;;  %s4648_s16 = smov 0  }
   0xa LB: > { %s4661_s17 = sadd.s32 4294967295, %s4571_s16   ;;  %p149_p0 = scmp.ne.s32.totalorder %s4563_s14, %s4559_s13  ;;  %s4571_s16 = sphi %s4648_s16, %s5255_s16   ;;  %s4567_s15 = sphi %s4646_s15, %s5254_s15   ;;  %s4563_s14 = sphi %s4644_s14, %s5253_s14   ;;  %s4559_s13 = sphi %s4642_s13, %s5252_s13  }
   0xb   : > { %p5217_p1 = scmp.eq.s32.totalorder %s4661_s17, 0  ;;  %p3267_p2 = scmp.ge.s32.totalorder %s4571_s16, 1 }
   0xc   : > { %p275_p3 = scmp.lt.s32.totalorder %s4571_s16, 3  ;;  %s4573_s20 = smov [#allocation4]  }
   0xd   : > { %p4670_p5 = por %p5217_p1, %p149_p0  ;;  %s287_s21 = sshll.u32 %s4573_s20, 4  ;;  %s288_s21 = int_to_ptr.vmem [resolvable:$true] %s287_s21 }
   0xe   : > { %p4674_p6 = pnand %p3267_p2, %p275_p3  ;;  %s4574_s23 = smov [#allocation7]  }
   0xf   : > { %s5226_s18 = scalar_select %p4670_p5, 1, 0 }
  0x10   : > { %s5227_s19 = scalar_select %p4674_p6, 1, 0 }
  0x11   : > { %p4115_p7 = pneg %p4674_p6  ;;  %s300_s24 = sshll.u32 %s4574_s23, 4  ;;  %s301_s24 = int_to_ptr.vmem [resolvable:$true] %s300_s24 }
  0x12   : > { %s4318_s26 = scalar_lea.vmem %s288_s21, 2048  ;;  %p4326_p13 = scmp.lt.s32.totalorder %s288_s21, %s288_s21 }
  0x13   : > { %p4682_p8 = pnand %p4115_p7, %p5217_p1  ;;  %p4319_p10 = scmp.ne.s32.totalorder %s288_s21, %s4318_s26 }
  0x14   : > { %p4327_p0 = scmp.lt.s32.totalorder %s4318_s26, %s4318_s26 }
  0x15   : > { %s5228_s22 = scalar_select %p4682_p8, 1, 0 }
  0x16   : > { %p4688_p9 = pneg %p4682_p8  ;;  %p4328_p2 = por %p4327_p0, %p4326_p13 }
  0x18   : > { %p4321_p11 = pnand %p4319_p10, %p4688_p9 }
  0x1a   : > { %p4322_p12 = pneg %p4321_p11 }
  0x1c   : > { %p4329_p3 = pnand %p4328_p2, %p4322_p12 }
  0x1e   : > { %4332 = shalt.err (!%p4329_p3)
}
  0x1f   : > { %s5212_s27 = smov 64   ;;  %s5214_s28 = smov 4  }
  0x20   : > { %s5230_s0 = sld [smem:[#allocation23_spill]]  ;;  %s4344_s11 = scalar_lea.vmem %s301_s24, 4096 }
  0x21   : > { %p4345_p7 = scmp.ne.s32.totalorder %s301_s24, %s4344_s11  ;;  %p4352_p13 = scmp.lt.s32.totalorder %s301_s24, %s301_s24 }
  0x22   : > { %p4353_p12 = scmp.lt.s32.totalorder %s4344_s11, %s4344_s11 }
  0x23   : > { %p4347_p10 = pnand %p4345_p7, %p4688_p9 }
  0x24   : > { %p4354_p0 = por %p4353_p12, %p4352_p13 }
  0x25   : > { %p4348_p11 = pneg %p4347_p10 }
  0x26   : > { %4118 = dma.hbm_to_vmem [thread:$0]  (!%p4682_p8), %s5230_s0, 2048, %s288_s21, [#allocation5], %s5212_s27, %s5212_s27, %s5214_s28  }
  0x27   : > { %p4355_p2 = pnand %p4354_p0, %p4348_p11 }
  0x29   : > { %4358 = shalt.err (!%p4355_p2)
}
  0x2a   : > { %s4577_s12 = smov 128   ;;  %s4578_s13 = smov 8  }
  0x2b   : > { %s5231_s1 = sld [smem:[#allocation24_spill]]  ;;  %s4579_s21 = smov [#allocation9]  }
  0x2c   : > { %s313_s26 = sshll.u32 %s4579_s21, 4  ;;  %s4710_s29 = sadd.s32 1, %s4571_s16   ;;  %s314_s26 = int_to_ptr.vmem [resolvable:$true] %s313_s26 }
  0x2d   : > { %s4370_s30 = scalar_lea.vmem %s314_s26, 2048  ;;  %p4378_p11 = scmp.lt.s32.totalorder %s314_s26, %s314_s26 }
  0x2e   : > { %p4371_p3 = scmp.ne.s32.totalorder %s314_s26, %s4370_s30  ;;  %p4379_p13 = scmp.lt.s32.totalorder %s4370_s30, %s4370_s30 }
  0x30   : > { %p4373_p7 = pnand %p4371_p3, %p4688_p9  ;;  %p4380_p12 = por %p4379_p13, %p4378_p11 }
  0x31   : > { %4121 = dma.hbm_to_vmem [thread:$0]  (!%p4682_p8), %s5231_s1, 4096, %s301_s24, [#allocation8], %s4577_s12, %s4577_s12, %s4578_s13  }
  0x32   : > { %p4374_p10 = pneg %p4373_p7 }
  0x34   : > { %p4381_p0 = pnand %p4380_p12, %p4374_p10 }
  0x36   : > { %4384 = shalt.err (!%p4381_p0)
}
  0x37   : > { %s5232_s2 = sld [smem:[#allocation25_spill]]  ;;  %s133_s12 = ssub.s32 %s4571_s16, %s4710_s29 }
  0x38   : > { %s136_s13 = sadd.s32 1, %s4567_s15  ;;  %p134_p2 = scmp.eq.s32.totalorder %s133_s12, 0 }
  0x39   : > { %p143_p3 = scmp.ne.s32.totalorder %s4567_s15, %s4563_s14  ;;  %p144_p7 = scmp.eq.s32.totalorder %s4571_s16, 0 }
  0x3a   : > { %p4143_p10 = scmp.lt.s32.totalorder %s4571_s16, 2  ;;  %s359_s23 = sand.u32 1, %s4571_s16  }
  0x3b   : > { %s4730_s20 = scalar_select %p134_p2, %s4567_s15, %s136_s13  }
  0x3c   : > { %p145_p11 = por %p144_p7, %p143_p3  ;;  %s361_s21 = sand.u32 1, %s4567_s15  }
  0x3d   : > { %4124 = dma.hbm_to_vmem [thread:$0]  (!%p4682_p8), %s5232_s2, 2048, %s314_s26, [#allocation8], %s5212_s27, %s5212_s27, %s5214_s28  }
  0x3e   : > { %5233 = sst [smem:[#allocation22_spill]] %s4730_s20  ;;  %s4734_s30 = smul.u32 192, %s361_s21 }
  0x3f   : > { %p4736_p13 = pnand %p4143_p10, %p145_p11  ;;  %s5216_s26 = smul.u32 3072, %s4571_s16 }
  0x40   : > { %s5235_s5 = sld [smem:[#allocation26_spill]]  ;;  %s363_s13 = scalar_lea.vmem [#allocation12], %s4734_s30 }
  0x41   : > { %s370_s21 = sshll.u32 %s363_s13, 4  ;;  %s4580_s28 = smov [#allocation10]   ;;  %s4749_s21 = int_to_ptr.vmem [resolvable:$true] %s370_s21 }
  0x42   : > { %s4751_s0 = sshll.u32 %s4580_s28, 4  ;;  %s4753_s1 = scalar_lea.sflag [#allocation5], %s359_s23  ;;  %s330_s0 = int_to_ptr.vmem [resolvable:$true] %s4751_s0 }
  0x43   : > { %p4387_p0 = pneg %p4736_p13 }
  0x46   : > { %s4746_s27 = scalar_lea.hbm %s5235_s5, %s5216_s26  ;;  %s4390_s26 = scalar_lea.hbm %s5235_s5, 6144 }
  0x47   : > { %s4385_s2 = scalar_lea.hbm %s4746_s27, 3072  ;;  %p4391_p7 = scmp.lt.s32.totalorder %s4746_s27, %s5235_s5 }
  0x48   : > { %p4386_p12 = scmp.ne.s32.totalorder %s4746_s27, %s4385_s2  ;;  %p4392_p10 = scmp.lt.s32.totalorder %s4390_s26, %s4385_s2 }
  0x4a   : > { %p4388_p2 = pnand %p4387_p0, %p4386_p12  ;;  %p4393_p11 = por %p4392_p10, %p4391_p7 }
  0x4c   : > { %p4389_p3 = pneg %p4388_p2 }
  0x4e   : > { %p4394_p4 = pnand %p4393_p11, %p4389_p3 }
  0x50   : > { %4397 = shalt.err (!%p4394_p4)
}
  0x51   : > { %s4398_s28 = scalar_lea.vmem %s4749_s21, 3072  ;;  %s4581_s23 = smov [#allocation12]  }
  0x52   : > { %p4399_p1 = scmp.ne.s32.totalorder %s4749_s21, %s4398_s28  ;;  %s4403_s11 = sshll.u32 %s4581_s23, 4  ;;  %s4404_s11 = int_to_ptr.vmem [resolvable:$false] %s4403_s11 }
  0x53   : > { %s4405_s12 = scalar_lea.vmem %s4404_s11, 6144  ;;  %p4406_p5 = scmp.lt.s32.totalorder %s4749_s21, %s4404_s11 }
  0x54   : > { %p4401_p12 = pnand %p4399_p1, %p4387_p0  ;;  %p4407_p6 = scmp.lt.s32.totalorder %s4405_s12, %s4398_s28 }
  0x56   : > { %p4402_p2 = pneg %p4401_p12  ;;  %p4408_p8 = por %p4407_p6, %p4406_p5 }
  0x58   : > { %p4409_p7 = pnand %p4408_p8, %p4402_p2 }
  0x5a   : > { %4412 = shalt.err (!%p4409_p7)
}
  0x5b   : > { %s5236_s2 = smov 4   ;;  %s5237_s20 = smov 64  }
  0x5c   : > { %4134 = dma.hbm_to_vmem [thread:$0]  (!%p4736_p13), %s4746_s27, 3072, %s4749_s21, %s4753_s1, %s5237_s20, %s5237_s20, %s5236_s2  }
  0x5d   : > { %s4424_s26 = scalar_lea.vmem %s330_s0, 3072  ;;  %p4432_p5 = scmp.lt.s32.totalorder %s330_s0, %s330_s0 }
  0x5e   : > { %p4425_p1 = scmp.ne.s32.totalorder %s330_s0, %s4424_s26  ;;  %p4433_p6 = scmp.lt.s32.totalorder %s4424_s26, %s4424_s26 }
  0x60   : > { %p4427_p4 = pnand %p4425_p1, %p4688_p9  ;;  %p4434_p8 = por %p4433_p6, %p4432_p5 }
  0x62   : > { %p4428_p3 = pneg %p4427_p4 }
  0x64   : > { %p4435_p10 = pnand %p4434_p8, %p4428_p3 }
  0x66   : > { %4438 = shalt.err (!%p4435_p10)
}
  0x67   : > { %p5238_p11 = scmp.ne.s32.totalorder %s5228_s22, 0  ;;  %s4582_s27 = smov [#allocation14]  }
  0x68   : > { %s342_s21 = sshll.u32 %s4582_s27, 4  ;;  %s5239_s23 = smul.u32 3072, %s4571_s16  ;;  %s343_s21 = int_to_ptr.vmem [resolvable:$true] %s342_s21 }
  0x69   : > { %4127 = dma.hbm_to_vmem [thread:$0]  (!%p5238_p11), %s5205_s4, 3072, %s330_s0, [#allocation11], %s5237_s20, %s5237_s20, %s5236_s2  }
  0x6a   : > { %s4799_s26 = scalar_lea.hbm %s5207_s6, %s5239_s23  ;;  %s4450_s5 = scalar_lea.vmem %s343_s21, 1024 }
  0x6b   : > { %p4451_p12 = scmp.ne.s32.totalorder %s343_s21, %s4450_s5  ;;  %p4458_p1 = scmp.lt.s32.totalorder %s343_s21, %s343_s21 }
  0x6c   : > { %p4459_p4 = scmp.lt.s32.totalorder %s4450_s5, %s4450_s5 }
  0x6d   : > { %p4453_p2 = pnand %p4451_p12, %p4688_p9 }
  0x6e   : > { %p4460_p3 = por %p4459_p4, %p4458_p1 }
  0x6f   : > { %p4454_p7 = pneg %p4453_p2 }
  0x71   : > { %p4461_p5 = pnand %p4460_p3, %p4454_p7 }
  0x73   : > { %4464 = shalt.err (!%p4461_p5)
}
  0x74   : > { %4130 = dma.hbm_to_vmem [thread:$0]  (!%p5238_p11), %s5209_s8, 1024, %s343_s21, [#allocation8], %s5237_s20, %s5237_s20, %s5236_s2  }
  0x75   : > { %s384_s25 = scalar_lea.vmem [#allocation13], %s4734_s30  ;;  %s4465_s5 = scalar_lea.hbm %s4799_s26, 3072 }
  0x76   : > { %s391_s13 = sshll.u32 %s384_s25, 4  ;;  %p4466_p9 = scmp.ne.s32.totalorder %s4799_s26, %s4465_s5  ;;  %s392_s13 = int_to_ptr.vmem [resolvable:$true] %s391_s13 }
  0x77   : > { %s4470_s27 = scalar_lea.hbm %s5207_s6, 6144  ;;  %p4471_p10 = scmp.lt.s32.totalorder %s4799_s26, %s5207_s6 }
  0x78   : > { %p4468_p6 = pnand %p4466_p9, %p4387_p0  ;;  %p4472_p12 = scmp.lt.s32.totalorder %s4470_s27, %s4465_s5 }
  0x7a   : > { %p4469_p8 = pneg %p4468_p6  ;;  %p4473_p2 = por %p4472_p12, %p4471_p10 }
  0x7c   : > { %p4474_p11 = pnand %p4473_p2, %p4469_p8 }
  0x7e   : > { %4477 = shalt.err (!%p4474_p11)
}
  0x7f   : > { %s4478_s30 = scalar_lea.vmem %s392_s13, 3072  ;;  %s4583_s21 = smov [#allocation13]  }
  0x80   : > { %p4479_p7 = scmp.ne.s32.totalorder %s392_s13, %s4478_s30  ;;  %s4483_s12 = sshll.u32 %s4583_s21, 4  ;;  %s4484_s12 = int_to_ptr.vmem [resolvable:$false] %s4483_s12 }
  0x81   : > { %s4485_s0 = scalar_lea.vmem %s4484_s12, 6144  ;;  %p4486_p3 = scmp.lt.s32.totalorder %s392_s13, %s4484_s12 }
  0x82   : > { %p4481_p1 = pnand %p4479_p7, %p4387_p0  ;;  %p4487_p5 = scmp.lt.s32.totalorder %s4485_s0, %s4478_s30 }
  0x84   : > { %p4482_p4 = pneg %p4481_p1  ;;  %p4488_p9 = por %p4487_p5, %p4486_p3 }
  0x86   : > { %p4489_p6 = pnand %p4488_p9, %p4482_p4 }
  0x88   : > { %4492 = shalt.err (!%p4489_p6)
}
  0x89   : > { %4137 = dma.hbm_to_vmem [thread:$0]  (!%p4736_p13), %s4799_s26, 3072, %s392_s13, %s4753_s1, %s5237_s20, %s5237_s20, %s5236_s2  }
  0x8a   : > { %p5240_p0 = scmp.ne.s32.totalorder %s5227_s19, 0 }
  0x8b   : > { %p5241_p8 = scmp.eq.s32.totalorder (!%p5240_p0), %s4661_s17, 0 }
  0x8c   : > { %410 = sbr.rel (%p5240_p0) target bundleno = 1429 (0x595), region = 60 }
  0x91   : > { %4534 = dma.done.wait (%p5241_p8), [#allocation5], 2048   ;;  %p5242_p10 = pmov %p5241_p8 }
  0x92   : > { %p5243_p12 = pmov %p5241_p8 }
  0x93   : > { %4536 = vsyncadd (%p5242_p10), [#allocation5], 4294965248 }
  0x94   : > { %4538 = dma.done.wait (%p5243_p12), [#allocation8], 6144   ;;  %p5244_p2 = pmov %p5241_p8 }
  0x96   : > { %4540 = vsyncadd (%p5244_p2), [#allocation8], 4294961152  ;;  %p5245_p11 = pmov %p5244_p2 }
  0x97   : > { %p5246_p13 = pmov %p5244_p2 }
  0x98   : > { %4542 = dma.done.wait (%p5245_p11), [#allocation11], 3072  }
  0x99   : > { %4544 = vsyncadd (%p5246_p13), [#allocation11], 4294964224  ;;  %s428_s1 = sand.u32 1, %s4661_s17   ;;  %s430_s19 = sand.u32 1, %s4563_s14  }
  0x9a   : > { %s4085_s24 = smul.u32 192, %s430_s19  ;;  %s429_s2 = scalar_lea.sflag [#allocation5], %s428_s1 }
  0x9b   : > { %p5247_p7 = scmp.ne.s32.totalorder %s5226_s18, 0 }
  0x9c   : > { %s4850_s20 = scalar_lea.vmem [#allocation12], %s4085_s24 }
  0x9d   : > { %4546 = dma.done.wait (%p5247_p7), %s429_s2, 6144  }
  0x9e   : > { %4548 = vsyncadd (%p5247_p7), %s429_s2, 4294961152  ;;  %s4856_s26 = scalar_lea.vmem [#allocation13], %s4085_s24  ;;  %p5248_p1 = pmov %p5244_p2 }
  0xa0   : > { %4550 = dma.done.wait (%p5248_p1), [#allocation8], 1024   ;;  %p5249_p4 = pmov %p5248_p1 }
  0xa1   : > { %p486_p3 = scmp.lt.s32.totalorder %s4661_s17, 1  ;;  %p5250_p5 = scmp.ne.s32.totalorder %s4661_s17, 0 }
  0xa2   : > { %4552 = vsyncadd (%p5249_p4), [#allocation8], 4294966272 }
  0xa3   : > { %s487_s16 = scalar_select %p486_p3, %s4661_s17, 1 }
  0xa4   : > { %494 = sbr.rel (%p5250_p5) target bundleno = 431 (0x1af), region = 92 }
  0xa5   : > { %s4086_s25 = smul.u32 3, %s487_s16 }
  0xa7   : > { %s4867_s22 = scalar_lea.vmem %s5208_s7, %s4086_s25 }
  0xa9   : > { %v4195_v0 = vld [vmem:[#allocation9 + $0x38] sm:$0xff]   ;;  %v4197_v2 = vld [vmem:[#allocation9 + $0x30] sm:$0xff]   ;;  %v4199_v4 = vld [vmem:[#allocation9 + $0x28] sm:$0xff]  }
  0xaa   : > { %v4196_v1 = vld [vmem:[#allocation9 + $0x78] sm:$0xff]   ;;  %3665 = vmatprep.subr.bf16.mxu0 %v4195_v0  ;;  %v4198_v3 = vld [vmem:[#allocation9 + $0x70] sm:$0xff]   ;;  %v4200_v5 = vld [vmem:[#allocation9 + $0x68] sm:$0xff]  }
  0xab   : > { %3697 = vmatprep.subr.bf16.mxu1 %v4196_v1  ;;  %3666 = vmatpush3.bf16.msra.mxu0 %v4195_v0  ;;  %v4201_v6 = vld [vmem:[#allocation9 + $0x20] sm:$0xff]   ;;  %v4203_v8 = vld [vmem:[#allocation9 + $0x18] sm:$0xff]   ;;  %v4205_v10 = vld [vmem:[#allocation9 + $0x10] sm:$0xff]  }
  0xac   : > { %3698 = vmatpush3.bf16.msra.mxu1 %v4196_v1  ;;  %3667 = vmatprep.subr.bf16.mxu0 %v4197_v2  ;;  %v4202_v7 = vld [vmem:[#allocation9 + $0x60] sm:$0xff]   ;;  %v4204_v9 = vld [vmem:[#allocation9 + $0x58] sm:$0xff]   ;;  %v4206_v11 = vld [vmem:[#allocation9 + $0x50] sm:$0xff]  }
  0xad   : > { %3699 = vmatprep.subr.bf16.mxu1 %v4198_v3  ;;  %v4211_v12 = vld [vmem:[#allocation4] sm:$0xff]   ;;  %v4207_v14 = vld [vmem:[#allocation9 + $0x8] sm:$0xff]   ;;  %v4215_v20 = vld [vmem:[#allocation4 + $0x10] sm:$0xff]  }
  0xae   : > { %v4212_v13 = vld [vmem:[#allocation4 + $0x40] sm:$0xff]   ;;  %3681 = vmatprep.mubr.bf16.mxu0 %v4211_v12  ;;  %v4208_v15 = vld [vmem:[#allocation9 + $0x48] sm:$0xff]   ;;  %v4216_v21 = vld [vmem:[#allocation4 + $0x50] sm:$0xff]  }
  0xaf   : > { %3668 = vmatpush3.bf16.msra.mxu0 %v4197_v2  ;;  %3713 = vmatprep.mubr.bf16.mxu1 %v4212_v13  ;;  %v4209_v16 = vld [vmem:[#allocation9] sm:$0xff]   ;;  %v4213_v18 = vld [vmem:[#allocation4 + $0x8] sm:$0xff]   ;;  %v4217_v22 = vld [vmem:[#allocation4 + $0x18] sm:$0xff]  }
  0xb0   : > { %3700 = vmatpush3.bf16.msra.mxu1 %v4198_v3  ;;  %3669 = vmatprep.subr.bf16.mxu0 %v4199_v4  ;;  %v4210_v17 = vld [vmem:[#allocation9 + $0x40] sm:$0xff]   ;;  %v4214_v19 = vld [vmem:[#allocation4 + $0x48] sm:$0xff]   ;;  %v4218_v23 = vld [vmem:[#allocation4 + $0x58] sm:$0xff]  }
  0xb1   : > { %3701 = vmatprep.subr.bf16.mxu1 %v4200_v5  ;;  %v4219_v24 = vld [vmem:[#allocation4 + $0x20] sm:$0xff]   ;;  %v4221_v26 = vld [vmem:[#allocation4 + $0x28] sm:$0xff]   ;;  %v4223_v28 = vld [vmem:[#allocation4 + $0x30] sm:$0xff]  }
  0xb2   : > { %v4220_v25 = vld [vmem:[#allocation4 + $0x60] sm:$0xff]   ;;  %v4222_v27 = vld [vmem:[#allocation4 + $0x68] sm:$0xff]   ;;  %v4224_v29 = vld [vmem:[#allocation4 + $0x70] sm:$0xff]  }
  0xb3   : > { %3670 = vmatpush3.bf16.msra.mxu0 %v4199_v4  ;;  %v4225_v30 = vld [vmem:[#allocation4 + $0x38] sm:$0xff]   ;;  %v4874_v32 = vld [vmem:[%s5204_s3] ss:$0 sm:$0xff]  ;;  %v4879_v33 = vld [vmem:[%s5204_s3 + $0x1] ss:$0 sm:$0xff] }
  0xb4   : > { %3702 = vmatpush3.bf16.msra.mxu1 %v4200_v5  ;;  %3671 = vmatprep.subr.bf16.mxu0 %v4201_v6  ;;  %v4226_v31 = vld [vmem:[#allocation4 + $0x78] sm:$0xff]   ;;  %v729_v35 = vld [vmem:[#allocation7 + $0x10] sm:$0xff]  ;;  %v727_v41 = vld [vmem:[#allocation7] sm:$0xff] }
  0xb5   : > { %3703 = vmatprep.subr.bf16.mxu1 %v4202_v7  ;;  %v1013_v38 = vld [vmem:[#allocation7 + $0x90] sm:$0xff]  ;;  %v1011_v45 = vld [vmem:[#allocation7 + $0x80] sm:$0xff]  ;;  %v730_v49 = vld [vmem:[#allocation7 + $0x18] sm:$0xff] }
  0xb6   : > { %v1014_v53 = vld [vmem:[#allocation7 + $0x98] sm:$0xff]  ;;  %v728_v57 = vld [vmem:[#allocation7 + $0x8] sm:$0xff]  ;;  %v733_v1 = vld [vmem:[#allocation7 + $0x30] sm:$0xff] }
  0xb7   : > { %3672 = vmatpush3.bf16.msra.mxu0 %v4201_v6  ;;  %v1012_v61 = vld [vmem:[#allocation7 + $0x88] sm:$0xff]  ;;  %v1017_v5 = vld [vmem:[#allocation7 + $0xb0] sm:$0xff]  ;;  %v1015_v13 = vld [vmem:[#allocation7 + $0xa0] sm:$0xff] }
  0xb8   : > { %3704 = vmatpush3.bf16.msra.mxu1 %v4202_v7  ;;  %3673 = vmatprep.subr.bf16.mxu0 %v4203_v8 }
  0xb9   : > { %3705 = vmatprep.subr.bf16.mxu1 %v4204_v9 }
  0xbb   : > { %3674 = vmatpush3.bf16.msra.mxu0 %v4203_v8 }
  0xbc   : > { %3706 = vmatpush3.bf16.msra.mxu1 %v4204_v9  ;;  %3675 = vmatprep.subr.bf16.mxu0 %v4205_v10  ;;  %v731_v9 = vld [vmem:[#allocation7 + $0x20] sm:$0xff] }
  0xbd   : > { %3707 = vmatprep.subr.bf16.mxu1 %v4206_v11 }
  0xbf   : > { %3676 = vmatpush3.bf16.msra.mxu0 %v4205_v10 }
  0xc0   : > { %3708 = vmatpush3.bf16.msra.mxu1 %v4206_v11  ;;  %3677 = vmatprep.subr.bf16.mxu0 %v4207_v14 }
  0xc1   : > { %3709 = vmatprep.subr.bf16.mxu1 %v4208_v15 }
  0xc3   : > { %3678 = vmatpush3.bf16.msra.mxu0 %v4207_v14 }
  0xc4   : > { %3710 = vmatpush3.bf16.msra.mxu1 %v4208_v15  ;;  %3679 = vmatprep.subr.bf16.mxu0 %v4209_v16 }
  0xc5   : > { %3711 = vmatprep.subr.bf16.mxu1 %v4210_v17 }
  0xc7   : > { %3680 = vmatpush3.bf16.msra.mxu0 %v4209_v16 }
  0xc8   : > { %3712 = vmatpush3.bf16.msra.mxu1 %v4210_v17  ;;  %v734_v17 = vld [vmem:[#allocation7 + $0x38] sm:$0xff] }
  0xca   : > { %3682 = vmatmul.mubr.bf16.vlgmr.msra.gmra.mxu0 %v4213_v18 }
  0xcb   : > { %3714 = vmatmul.mubr.bf16.vlgmr.msra.gmra.mxu1 %v4214_v19  ;;  %3685 = vmatprep.mubr.bf16.mxu0 %v4215_v20 }
  0xcc   : > { %3717 = vmatprep.mubr.bf16.mxu1 %v4216_v21  ;;  %v1018_v21 = vld [vmem:[#allocation7 + $0xb8] sm:$0xff] }
  0xd2   : > { %3686 = vmatmul.mubr.bf16.gmra.mxu0 %v4217_v22 }
  0xd3   : > { %3718 = vmatmul.mubr.bf16.gmra.mxu1 %v4218_v23  ;;  %3689 = vmatprep.mubr.bf16.mxu0 %v4219_v24 }
  0xd4   : > { %3721 = vmatprep.mubr.bf16.mxu1 %v4220_v25  ;;  %v732_v25 = vld [vmem:[#allocation7 + $0x28] sm:$0xff] }
  0xda   : > { %3690 = vmatmul.mubr.bf16.gmra.mxu0 %v4221_v26 }
  0xdb   : > { %3722 = vmatmul.mubr.bf16.gmra.mxu1 %v4222_v27  ;;  %3693 = vmatprep.mubr.bf16.mxu0 %v4223_v28 }
  0xdc   : > { %3725 = vmatprep.mubr.bf16.mxu1 %v4224_v29  ;;  %v1016_v29 = vld [vmem:[#allocation7 + $0xa8] sm:$0xff] }
  0xe2   : > { %3694 = vmatmul.mubr.bf16.gmra.mxu0 %v4225_v30 }
  0xe3   : > { %3726 = vmatmul.mubr.bf16.gmra.mxu1 %v4226_v31 }
 0x18a   : > { %v3683_v34 = vpop.f32.mrf.mxu0 }
 0x18b   : > { %v673_v36 = vadd.f32 %v3683_v34, %v4874_v32  ;;  %v3715_v37 = vpop.f32.mrf.mxu1 }
 0x18c   : > { %v956_v39 = vadd.f32 %v3715_v37, %v4879_v33  ;;  %v664_v40 = vpop.f32.mrf.mxu0 }
 0x18d   : > { %v745_v42 = vadd.f32 %v729_v35, %v673_v36  ;;  %v665_v43 = vadd.f32 %v4874_v32, %v664_v40  ;;  %v947_v44 = vpop.f32.mrf.mxu1  ;;  %v737_v35 = vld [vmem:[#allocation7 + $0x50] sm:$0xff] }
 0x18e   : > { %v1029_v46 = vadd.f32 %v1013_v38, %v956_v39  ;;  %v948_v47 = vadd.f32 %v4879_v33, %v947_v44  ;;  %v3684_v48 = vpop.f32.mrf.mxu0  ;;  %v1021_v39 = vld [vmem:[#allocation7 + $0xd0] sm:$0xff] }
 0x18f   : > { %761 = vst [vmem:[#allocation2 + $0xd8] sm:$0xff] %v745_v42  ;;  %v743_v50 = vadd.f32 %v727_v41, %v665_v43  ;;  %v676_v51 = vadd.f32 %v3684_v48, %v4874_v32  ;;  %v3716_v52 = vpop.f32.mrf.mxu1  ;;  %v735_v43 = vld [vmem:[#allocation7 + $0x40] sm:$0xff] }
 0x190   : > { %1046 = vst [vmem:[#allocation2 + $0x40] sm:$0xff] %v1029_v46  ;;  %v1027_v54 = vadd.f32 %v1011_v45, %v948_v47  ;;  %v959_v55 = vadd.f32 %v3716_v52, %v4879_v33  ;;  %v667_v56 = vpop.f32.mrf.mxu0  ;;  %v1019_v47 = vld [vmem:[#allocation7 + $0xc0] sm:$0xff] }
 0x191   : > { %759 = vst [vmem:[#allocation2 + $0xb0] sm:$0xff] %v743_v50  ;;  %v746_v58 = vadd.f32 %v730_v49, %v676_v51  ;;  %v668_v59 = vadd.f32 %v4874_v32, %v667_v56  ;;  %v950_v60 = vpop.f32.mrf.mxu1  ;;  %v738_v51 = vld [vmem:[#allocation7 + $0x58] sm:$0xff] }
 0x192   : > { %1044 = vst [vmem:[#allocation2 + $0x38] sm:$0xff] %v1027_v54  ;;  %v1030_v62 = vadd.f32 %v1014_v53, %v959_v55  ;;  %v951_v63 = vadd.f32 %v4879_v33, %v950_v60  ;;  %v3687_v0 = vpop.f32.mrf.mxu0  ;;  %v1022_v55 = vld [vmem:[#allocation7 + $0xd8] sm:$0xff] }
 0x193   : > { %762 = vst [vmem:[#allocation2 + $0x18] sm:$0xff] %v746_v58  ;;  %v744_v2 = vadd.f32 %v728_v57, %v668_v59  ;;  %v689_v3 = vadd.f32 %v3687_v0, %v4874_v32  ;;  %v3719_v4 = vpop.f32.mrf.mxu1  ;;  %v736_v59 = vld [vmem:[#allocation7 + $0x48] sm:$0xff] }
 0x194   : > { %1047 = vst [vmem:[#allocation2 + $0xc8] sm:$0xff] %v1030_v62  ;;  %v1028_v6 = vadd.f32 %v1012_v61, %v951_v63  ;;  %v972_v7 = vadd.f32 %v3719_v4, %v4879_v33  ;;  %v680_v8 = vpop.f32.mrf.mxu0  ;;  %v1020_v63 = vld [vmem:[#allocation7 + $0xc8] sm:$0xff] }
 0x195   : > { %760 = vst [vmem:[#allocation2] sm:$0xff] %v744_v2  ;;  %v749_v10 = vadd.f32 %v733_v1, %v689_v3  ;;  %v681_v11 = vadd.f32 %v4874_v32, %v680_v8  ;;  %v963_v12 = vpop.f32.mrf.mxu1  ;;  %v741_v3 = vld [vmem:[#allocation7 + $0x70] sm:$0xff] }
 0x196   : > { %1045 = vst [vmem:[#allocation2 + $0x58] sm:$0xff] %v1028_v6  ;;  %v1033_v14 = vadd.f32 %v1017_v5, %v972_v7  ;;  %v964_v15 = vadd.f32 %v4879_v33, %v963_v12  ;;  %v3688_v16 = vpop.f32.mrf.mxu0  ;;  %v1025_v7 = vld [vmem:[#allocation7 + $0xf0] sm:$0xff] }
 0x197   : > { %765 = vst [vmem:[#allocation2 + $0x30] sm:$0xff] %v749_v10  ;;  %v747_v18 = vadd.f32 %v731_v9, %v681_v11  ;;  %v692_v19 = vadd.f32 %v3688_v16, %v4874_v32  ;;  %v3720_v20 = vpop.f32.mrf.mxu1  ;;  %v739_v11 = vld [vmem:[#allocation7 + $0x60] sm:$0xff] }
 0x198   : > { %1050 = vst [vmem:[#allocation2 + $0x70] sm:$0xff] %v1033_v14  ;;  %v1031_v22 = vadd.f32 %v1015_v13, %v964_v15  ;;  %v975_v23 = vadd.f32 %v3720_v20, %v4879_v33  ;;  %v683_v24 = vpop.f32.mrf.mxu0  ;;  %v1023_v15 = vld [vmem:[#allocation7 + $0xe0] sm:$0xff] }
 0x199   : > { %763 = vst [vmem:[#allocation2 + $0x50] sm:$0xff] %v747_v18  ;;  %v750_v26 = vadd.f32 %v734_v17, %v692_v19  ;;  %v684_v27 = vadd.f32 %v4874_v32, %v683_v24  ;;  %v966_v28 = vpop.f32.mrf.mxu1  ;;  %v742_v19 = vld [vmem:[#allocation7 + $0x78] sm:$0xff] }
 0x19a   : > { %1048 = vst [vmem:[#allocation2 + $0xe0] sm:$0xff] %v1031_v22  ;;  %v1034_v30 = vadd.f32 %v1018_v21, %v975_v23  ;;  %v967_v31 = vadd.f32 %v4879_v33, %v966_v28  ;;  %v3691_v34 = vpop.f32.mrf.mxu0  ;;  %v1026_v23 = vld [vmem:[#allocation7 + $0xf8] sm:$0xff] }
 0x19b   : > { %766 = vst [vmem:[#allocation2 + $0x48] sm:$0xff] %v750_v26  ;;  %v748_v36 = vadd.f32 %v732_v25, %v684_v27  ;;  %v705_v37 = vadd.f32 %v3691_v34, %v4874_v32  ;;  %v3723_v38 = vpop.f32.mrf.mxu1  ;;  %v740_v27 = vld [vmem:[#allocation7 + $0x68] sm:$0xff] }
 0x19c   : > { %1051 = vst [vmem:[#allocation2 + $0xc0] sm:$0xff] %v1034_v30  ;;  %v1032_v40 = vadd.f32 %v1016_v29, %v967_v31  ;;  %v988_v41 = vadd.f32 %v3723_v38, %v4879_v33  ;;  %v696_v42 = vpop.f32.mrf.mxu0  ;;  %v1024_v31 = vld [vmem:[#allocation7 + $0xe8] sm:$0xff] }
 0x19d   : > { %764 = vst [vmem:[#allocation2 + $0x68] sm:$0xff] %v748_v36  ;;  %v753_v44 = vadd.f32 %v737_v35, %v705_v37  ;;  %v697_v45 = vadd.f32 %v4874_v32, %v696_v42  ;;  %v979_v46 = vpop.f32.mrf.mxu1 }
 0x19e   : > { %1049 = vst [vmem:[#allocation2 + $0x90] sm:$0xff] %v1032_v40  ;;  %v1037_v48 = vadd.f32 %v1021_v39, %v988_v41  ;;  %v980_v49 = vadd.f32 %v4879_v33, %v979_v46  ;;  %v3692_v50 = vpop.f32.mrf.mxu0 }
 0x19f   : > { %769 = vst [vmem:[#allocation2 + $0xe8] sm:$0xff] %v753_v44  ;;  %v751_v52 = vadd.f32 %v735_v43, %v697_v45  ;;  %v708_v53 = vadd.f32 %v3692_v50, %v4874_v32  ;;  %v3724_v54 = vpop.f32.mrf.mxu1 }
 0x1a0   : > { %1054 = vst [vmem:[#allocation2 + $0x10] sm:$0xff] %v1037_v48  ;;  %v1035_v56 = vadd.f32 %v1019_v47, %v980_v49  ;;  %v991_v57 = vadd.f32 %v3724_v54, %v4879_v33  ;;  %v699_v58 = vpop.f32.mrf.mxu0 }
 0x1a1   : > { %767 = vst [vmem:[#allocation2 + $0x80] sm:$0xff] %v751_v52  ;;  %v754_v60 = vadd.f32 %v738_v51, %v708_v53  ;;  %v700_v61 = vadd.f32 %v4874_v32, %v699_v58  ;;  %v982_v62 = vpop.f32.mrf.mxu1 }
 0x1a2   : > { %1052 = vst [vmem:[#allocation2 + $0xa8] sm:$0xff] %v1035_v56  ;;  %v1038_v0 = vadd.f32 %v1022_v55, %v991_v57  ;;  %v983_v1 = vadd.f32 %v4879_v33, %v982_v62  ;;  %v3695_v2 = vpop.f32.mrf.mxu0 }
 0x1a3   : > { %770 = vst [vmem:[#allocation2 + $0xb8] sm:$0xff] %v754_v60  ;;  %v752_v4 = vadd.f32 %v736_v59, %v700_v61  ;;  %v721_v5 = vadd.f32 %v3695_v2, %v4874_v32  ;;  %v3727_v6 = vpop.f32.mrf.mxu1 }
 0x1a4   : > { %1055 = vst [vmem:[#allocation2 + $0x28] sm:$0xff] %v1038_v0  ;;  %v1036_v8 = vadd.f32 %v1020_v63, %v983_v1  ;;  %v1004_v9 = vadd.f32 %v3727_v6, %v4879_v33  ;;  %v712_v10 = vpop.f32.mrf.mxu0 }
 0x1a5   : > { %768 = vst [vmem:[#allocation2 + $0x88] sm:$0xff] %v752_v4  ;;  %v757_v12 = vadd.f32 %v741_v3, %v721_v5  ;;  %v713_v13 = vadd.f32 %v4874_v32, %v712_v10  ;;  %v995_v14 = vpop.f32.mrf.mxu1 }
 0x1a6   : > { %1053 = vst [vmem:[#allocation2 + $0xd0] sm:$0xff] %v1036_v8  ;;  %v1041_v16 = vadd.f32 %v1025_v7, %v1004_v9  ;;  %v996_v17 = vadd.f32 %v4879_v33, %v995_v14  ;;  %v3696_v18 = vpop.f32.mrf.mxu0 }
 0x1a7   : > { %773 = vst [vmem:[#allocation2 + $0x8] sm:$0xff] %v757_v12  ;;  %v755_v20 = vadd.f32 %v739_v11, %v713_v13  ;;  %v724_v21 = vadd.f32 %v3696_v18, %v4874_v32  ;;  %v3728_v22 = vpop.f32.mrf.mxu1 }
 0x1a8   : > { %1058 = vst [vmem:[#allocation2 + $0x20] sm:$0xff] %v1041_v16  ;;  %v1039_v24 = vadd.f32 %v1023_v15, %v996_v17  ;;  %v1007_v25 = vadd.f32 %v3728_v22, %v4879_v33  ;;  %v715_v26 = vpop.f32.mrf.mxu0 }
 0x1a9   : > { %771 = vst [vmem:[#allocation2 + $0x60] sm:$0xff] %v755_v20  ;;  %v758_v28 = vadd.f32 %v742_v19, %v724_v21  ;;  %v716_v29 = vadd.f32 %v4874_v32, %v715_v26  ;;  %v998_v30 = vpop.f32.mrf.mxu1 }
 0x1aa   : > { %1056 = vst [vmem:[#allocation2 + $0xa0] sm:$0xff] %v1039_v24  ;;  %v1042_v34 = vadd.f32 %v1026_v23, %v1007_v25  ;;  %v999_v35 = vadd.f32 %v4879_v33, %v998_v30 }
 0x1ab   : > { %774 = vst [vmem:[#allocation2 + $0x78] sm:$0xff] %v758_v28  ;;  %v756_v36 = vadd.f32 %v740_v27, %v716_v29 }
 0x1ac   : > { %1059 = vst [vmem:[#allocation2 + $0x98] sm:$0xff] %v1042_v34  ;;  %v1040_v37 = vadd.f32 %v1024_v31, %v999_v35 }
 0x1ad   : > { %772 = vst [vmem:[#allocation2 + $0xf0] sm:$0xff] %v756_v36 }
 0x1ae   : > { %1057 = vst [vmem:[#allocation2 + $0xf8] sm:$0xff] %v1040_v37 }
 0x1af PF: > { %v1099_v38 = vld [vmem:[#allocation2 + $0x20] sm:$0xff]  ;;  %v4227_v32 = vld [vmem:[%s4856_s26 + $0x78] sm:$0xff]   ;;  %v4228_v33 = vld [vmem:[%s4856_s26 + $0x70] sm:$0xff]   ;;  %p3459_p9 = scmp.ne.s32.totalorder %s4661_s17, 1 }
 0x1b0   : > { %3761 = vmatprep.subr.bf16.mxu1 %v4227_v32  ;;  %v1095_v44 = vld [vmem:[#allocation2 + $0x10] sm:$0xff]  ;;  %v1096_v45 = vld [vmem:[#allocation2 + $0x28] sm:$0xff]  ;;  %v4230_v51 = vld [vmem:[%s4856_s26 + $0x60] sm:$0xff]  }
 0x1b1   : > { %v1097_v41 = vld [vmem:[#allocation2 + $0xa0] sm:$0xff]  ;;  %3762 = vmatpush3.bf16.msra.mxu1 %v4227_v32  ;;  %v1106_v46 = vpack.c.bf16 %v1096_v45, %v1095_v44  ;;  %v4229_v47 = vld [vmem:[%s4856_s26 + $0x68] sm:$0xff]   ;;  %v1094_v49 = vld [vmem:[#allocation2 + $0xd0] sm:$0xff] }
 0x1b2   : > { %3763 = vmatprep.subr.bf16.mxu1 %v4228_v33  ;;  %v1093_v48 = vld [vmem:[#allocation2 + $0xa8] sm:$0xff]  ;;  %v1091_v52 = vld [vmem:[#allocation2 + $0x70] sm:$0xff]  ;;  %v1092_v53 = vld [vmem:[#allocation2 + $0xc0] sm:$0xff] }
 0x1b3   : > { %v1100_v39 = vld [vmem:[#allocation2 + $0x98] sm:$0xff]  ;;  %v1105_v50 = vpack.c.bf16 %v1094_v49, %v1093_v48  ;;  %v1089_v55 = vld [vmem:[#allocation2 + $0xe0] sm:$0xff]  ;;  %v1104_v56 = vpack.c.bf16 %v1092_v53, %v1091_v52  ;;  %v1090_v57 = vld [vmem:[#allocation2 + $0x90] sm:$0xff] }
 0x1b4   : > { %v1108_v40 = vpack.c.bf16 %v1100_v39, %v1099_v38  ;;  %v4231_v54 = vld [vmem:[%s4856_s26 + $0x58] sm:$0xff]   ;;  %v4235_v58 = vld [vmem:[#allocation10 + $0x40] sm:$0xff]   ;;  %v1060_v59 = vld [vmem:[#allocation2 + $0xb0] sm:$0xff]  ;;  %v1103_v62 = vpack.c.bf16 %v1090_v57, %v1089_v55 }
 0x1b5   : > { %v1098_v42 = vld [vmem:[#allocation2 + $0xf8] sm:$0xff]  ;;  %3764 = vmatpush3.bf16.msra.mxu1 %v4228_v33  ;;  %v1061_v60 = vld [vmem:[#allocation2] sm:$0xff]  ;;  %v4232_v63 = vld [vmem:[%s4856_s26 + $0x50] sm:$0xff]   ;;  %3745 = vmatprep.mubr.bf16.mxu0 %v4235_v58 }
 0x1b6   : > { %3729 = vmatprep.subr.bf16.mxu0 %v1108_v40  ;;  %v1107_v43 = vpack.c.bf16 %v1098_v42, %v1097_v41  ;;  %3765 = vmatprep.subr.bf16.mxu1 %v4229_v47  ;;  %v4918_v61 = vpack.c.bf16 %v1061_v60, %v1060_v59  ;;  %v1087_v0 = vld [vmem:[#allocation2 + $0x40] sm:$0xff]  ;;  %v1088_v1 = vld [vmem:[#allocation2 + $0xc8] sm:$0xff]  ;;  %v1085_v4 = vld [vmem:[#allocation2 + $0x38] sm:$0xff] }
 0x1b7   : > { %3730 = vmatpush3.bf16.msra.mxu0 %v1108_v40  ;;  %v1102_v2 = vpack.c.bf16 %v1088_v1, %v1087_v0  ;;  %v4233_v3 = vld [vmem:[%s4856_s26 + $0x48] sm:$0xff]   ;;  %v1086_v5 = vld [vmem:[#allocation2 + $0x58] sm:$0xff]  ;;  %v4234_v6 = vld [vmem:[%s4856_s26 + $0x40] sm:$0xff]  }
 0x1b8   : > { %3731 = vmatprep.subr.bf16.mxu0 %v1107_v43  ;;  %3777 = vmatprep.mubr.bf16.mxu1 %v4918_v61  ;;  %v1101_v7 = vpack.c.bf16 %v1086_v5, %v1085_v4  ;;  %v1074_v8 = vld [vmem:[#allocation2 + $0x8] sm:$0xff]  ;;  %v1062_v9 = vld [vmem:[#allocation2 + $0xd8] sm:$0xff]  ;;  %v1072_v12 = vld [vmem:[#allocation2 + $0x60] sm:$0xff] }
 0x1b9   : > { %3766 = vmatpush3.bf16.msra.mxu1 %v4229_v47  ;;  %v1075_v10 = vld [vmem:[#allocation2 + $0x78] sm:$0xff]  ;;  %v1073_v13 = vld [vmem:[#allocation2 + $0xf0] sm:$0xff]  ;;  %v1065_v16 = vld [vmem:[#allocation2 + $0x68] sm:$0xff] }
 0x1ba   : > { %3767 = vmatprep.subr.bf16.mxu1 %v4230_v51  ;;  %v1063_v11 = vld [vmem:[#allocation2 + $0x18] sm:$0xff]  ;;  %v4924_v14 = vpack.c.bf16 %v1075_v10, %v1074_v8  ;;  %v1064_v15 = vld [vmem:[#allocation2 + $0x50] sm:$0xff]  ;;  %v4236_v17 = vld [vmem:[#allocation10 + $0x48] sm:$0xff]   ;;  %v4929_v20 = vpack.c.bf16 %v1073_v13, %v1072_v12 }
 0x1bb   : > { %3732 = vmatpush3.bf16.msra.mxu0 %v1107_v43  ;;  %v4926_v18 = vpack.c.bf16 %v1063_v11, %v1062_v9  ;;  %v4237_v19 = vld [vmem:[#allocation10 + $0x50] sm:$0xff]   ;;  %v4931_v21 = vpack.c.bf16 %v1065_v16, %v1064_v15  ;;  %v1070_v22 = vld [vmem:[#allocation2 + $0xe8] sm:$0xff]  ;;  %v1071_v25 = vld [vmem:[#allocation2 + $0xb8] sm:$0xff] }
 0x1bc   : > { %3733 = vmatprep.subr.bf16.mxu0 %v1106_v46  ;;  %v1066_v23 = vld [vmem:[#allocation2 + $0x30] sm:$0xff]  ;;  %v1067_v24 = vld [vmem:[#allocation2 + $0x48] sm:$0xff]  ;;  %v4251_v26 = vld [vmem:[%s4850_s20 + $0x78] sm:$0xff]   ;;  %v4939_v28 = vpack.c.bf16 %v1071_v25, %v1070_v22 }
 0x1bd   : > { %3768 = vmatpush3.bf16.msra.mxu1 %v4230_v51  ;;  %v4252_v27 = vld [vmem:[%s4850_s20 + $0x70] sm:$0xff]   ;;  %v1068_v29 = vld [vmem:[#allocation2 + $0x80] sm:$0xff]  ;;  %v1069_v30 = vld [vmem:[#allocation2 + $0x88] sm:$0xff]  ;;  %v4941_v34 = vpack.c.bf16 %v1067_v24, %v1066_v23 }
 0x1be   : > { %3769 = vmatprep.subr.bf16.mxu1 %v4231_v54  ;;  %v4238_v31 = vld [vmem:[#allocation10 + $0x58] sm:$0xff]   ;;  %v4239_v35 = vld [vmem:[#allocation10 + $0x60] sm:$0xff]   ;;  %v4945_v36 = vpack.c.bf16 %v1069_v30, %v1068_v29  ;;  %v4253_v37 = vld [vmem:[%s4850_s20 + $0x68] sm:$0xff]  }
 0x1bf   : > { %3734 = vmatpush3.bf16.msra.mxu0 %v1106_v46  ;;  %v4240_v38 = vld [vmem:[#allocation10 + $0x68] sm:$0xff]   ;;  %v4241_v39 = vld [vmem:[#allocation10 + $0x70] sm:$0xff]   ;;  %v4254_v40 = vld [vmem:[%s4850_s20 + $0x60] sm:$0xff]  }
 0x1c0   : > { %3735 = vmatprep.subr.bf16.mxu0 %v1105_v50  ;;  %v4255_v32 = vld [vmem:[%s4850_s20 + $0x58] sm:$0xff]   ;;  %v4243_v42 = vld [vmem:[#allocation10 + $0x80] sm:$0xff]   ;;  %v4256_v43 = vld [vmem:[%s4850_s20 + $0x50] sm:$0xff]  }
 0x1c1   : > { %3770 = vmatpush3.bf16.msra.mxu1 %v4231_v54  ;;  %v4242_v41 = vld [vmem:[#allocation10 + $0x78] sm:$0xff]   ;;  %v4244_v33 = vld [vmem:[#allocation10 + $0x88] sm:$0xff]   ;;  %v4245_v44 = vld [vmem:[#allocation10 + $0x90] sm:$0xff]  }
 0x1c2   : > { %3771 = vmatprep.subr.bf16.mxu1 %v4232_v63  ;;  %v4246_v45 = vld [vmem:[#allocation10 + $0x98] sm:$0xff]   ;;  %v4247_v46 = vld [vmem:[#allocation10 + $0xa0] sm:$0xff]   ;;  %v4248_v47 = vld [vmem:[#allocation10 + $0xa8] sm:$0xff]  }
 0x1c3   : > { %3736 = vmatpush3.bf16.msra.mxu0 %v1105_v50  ;;  %v4249_v48 = vld [vmem:[#allocation10 + $0xb0] sm:$0xff]   ;;  %v4250_v49 = vld [vmem:[#allocation10 + $0xb8] sm:$0xff]   ;;  %v4257_v50 = vld [vmem:[%s4850_s20 + $0x48] sm:$0xff]  }
 0x1c4   : > { %3737 = vmatprep.subr.bf16.mxu0 %v1104_v56  ;;  %v4258_v51 = vld [vmem:[%s4850_s20 + $0x40] sm:$0xff]   ;;  %v4259_v52 = vld [vmem:[%s4856_s26 + $0xb8] sm:$0xff]   ;;  %v4262_v54 = vld [vmem:[%s4850_s20 + $0xb0] sm:$0xff]  }
 0x1c5   : > { %3772 = vmatpush3.bf16.msra.mxu1 %v4232_v63  ;;  %v4260_v53 = vld [vmem:[%s4850_s20 + $0xb8] sm:$0xff]   ;;  %v4264_v55 = vld [vmem:[%s4850_s20 + $0xa8] sm:$0xff]   ;;  %v4270_v58 = vld [vmem:[%s4850_s20 + $0x90] sm:$0xff]  }
 0x1c6   : > { %3773 = vmatprep.subr.bf16.mxu1 %v4233_v3  ;;  %v4268_v57 = vld [vmem:[%s4850_s20 + $0x98] sm:$0xff]   ;;  %v4272_v59 = vld [vmem:[%s4850_s20 + $0x88] sm:$0xff]   ;;  %v4274_v60 = vld [vmem:[%s4850_s20 + $0x80] sm:$0xff]  }
 0x1c7   : > { %3738 = vmatpush3.bf16.msra.mxu0 %v1104_v56  ;;  %v4266_v56 = vld [vmem:[%s4850_s20 + $0xa0] sm:$0xff]   ;;  %v4261_v10 = vld [vmem:[%s4856_s26 + $0xb0] sm:$0xff]   ;;  %v4263_v16 = vld [vmem:[%s4856_s26 + $0xa8] sm:$0xff]  }
 0x1c8   : > { %3739 = vmatprep.subr.bf16.mxu0 %v1103_v62 }
 0x1c9   : > { %3774 = vmatpush3.bf16.msra.mxu1 %v4233_v3 }
 0x1ca   : > { %3775 = vmatprep.subr.bf16.mxu1 %v4234_v6 }
 0x1cb   : > { %3740 = vmatpush3.bf16.msra.mxu0 %v1103_v62 }
 0x1cc   : > { %3741 = vmatprep.subr.bf16.mxu0 %v1102_v2 }
 0x1cd   : > { %3776 = vmatpush3.bf16.msra.mxu1 %v4234_v6 }
 0x1ce   : > { %3825 = vmatprep.subr.bf16.mxu1 %v4924_v14 }
 0x1cf   : > { %3742 = vmatpush3.bf16.msra.mxu0 %v1102_v2 }
 0x1d0   : > { %3743 = vmatprep.subr.bf16.mxu0 %v1101_v7  ;;  %3778 = vmatmul.mubr.bf16.vlgmr.msra.gmra.mxu1 %v4926_v18 }
 0x1d1   : > { %3826 = vmatpush3.bf16.msra.mxu1 %v4924_v14  ;;  %3781 = vmatprep.mubr.bf16.mxu1 %v4931_v21 }
 0x1d2   : > { %3827 = vmatprep.subr.bf16.mxu1 %v4929_v20 }
 0x1d3   : > { %3744 = vmatpush3.bf16.msra.mxu0 %v1101_v7 }
 0x1d4   : > { %3793 = vmatprep.subr.bf16.mxu0 %v4251_v26 }
 0x1d5   : > { %3828 = vmatpush3.bf16.msra.mxu1 %v4929_v20 }
 0x1d6   : > { %3746 = vmatmul.mubr.bf16.vlgmr.msra.gmra.mxu0 %v4236_v17  ;;  %3829 = vmatprep.subr.bf16.mxu1 %v4939_v28 }
 0x1d7   : > { %3749 = vmatprep.mubr.bf16.mxu0 %v4237_v19  ;;  %3794 = vmatpush3.bf16.msra.mxu0 %v4251_v26  ;;  %v4265_v26 = vld [vmem:[%s4856_s26 + $0xa0] sm:$0xff]  }
 0x1d8   : > { %3795 = vmatprep.subr.bf16.mxu0 %v4252_v27  ;;  %3782 = vmatmul.mubr.bf16.gmra.mxu1 %v4941_v34 }
 0x1d9   : > { %3830 = vmatpush3.bf16.msra.mxu1 %v4939_v28  ;;  %3785 = vmatprep.mubr.bf16.mxu1 %v4945_v36 }
 0x1da   : > { %3831 = vmatprep.subr.bf16.mxu1 %v4945_v36 }
 0x1db   : > { %3796 = vmatpush3.bf16.msra.mxu0 %v4252_v27 }
 0x1dc   : > { %3797 = vmatprep.subr.bf16.mxu0 %v4253_v37 }
 0x1dd   : > { %3832 = vmatpush3.bf16.msra.mxu1 %v4945_v36 }
 0x1de   : > { %3750 = vmatmul.mubr.bf16.gmra.mxu0 %v4238_v31  ;;  %3833 = vmatprep.subr.bf16.mxu1 %v4941_v34 }
 0x1df   : > { %3753 = vmatprep.mubr.bf16.mxu0 %v4239_v35  ;;  %3798 = vmatpush3.bf16.msra.mxu0 %v4253_v37  ;;  %v4267_v35 = vld [vmem:[%s4856_s26 + $0x98] sm:$0xff]  }
 0x1e0   : > { %3786 = vmatmul.mubr.bf16.gmra.mxu1 %v4939_v28  ;;  %3799 = vmatprep.subr.bf16.mxu0 %v4254_v40 }
 0x1e1   : > { %3834 = vmatpush3.bf16.msra.mxu1 %v4941_v34  ;;  %3789 = vmatprep.mubr.bf16.mxu1 %v4929_v20 }
 0x1e2   : > { %3835 = vmatprep.subr.bf16.mxu1 %v4931_v21 }
 0x1e3   : > { %3800 = vmatpush3.bf16.msra.mxu0 %v4254_v40 }
 0x1e4   : > { %3801 = vmatprep.subr.bf16.mxu0 %v4255_v32 }
 0x1e5   : > { %3836 = vmatpush3.bf16.msra.mxu1 %v4931_v21 }
 0x1e6   : > { %3754 = vmatmul.mubr.bf16.gmra.mxu0 %v4240_v38  ;;  %3837 = vmatprep.subr.bf16.mxu1 %v4926_v18 }
 0x1e7   : > { %3757 = vmatprep.mubr.bf16.mxu0 %v4241_v39  ;;  %3802 = vmatpush3.bf16.msra.mxu0 %v4255_v32 }
 0x1e8   : > { %3790 = vmatmul.mubr.bf16.gmra.mxu1 %v4924_v14  ;;  %3803 = vmatprep.subr.bf16.mxu0 %v4256_v43 }
 0x1e9   : > { %3838 = vmatpush3.bf16.msra.mxu1 %v4926_v18  ;;  %3841 = vmatprep.mubr.bf16.mxu1 %v4243_v42  ;;  %v4269_v42 = vld [vmem:[%s4856_s26 + $0x90] sm:$0xff]  }
 0x1ea   : > { %3839 = vmatprep.subr.bf16.mxu1 %v4918_v61 }
 0x1eb   : > { %3804 = vmatpush3.bf16.msra.mxu0 %v4256_v43 }
 0x1ec   : > { %3805 = vmatprep.subr.bf16.mxu0 %v4257_v50 }
 0x1ed   : > { %3840 = vmatpush3.bf16.msra.mxu1 %v4918_v61 }
 0x1ee   : > { %3758 = vmatmul.mubr.bf16.gmra.mxu0 %v4242_v41  ;;  %3889 = vmatprep.subr.bf16.mxu1 %v4260_v53 }
 0x1ef   : > { %3806 = vmatpush3.bf16.msra.mxu0 %v4257_v50 }
 0x1f0   : > { %3842 = vmatmul.mubr.bf16.vlgmr.msra.gmra.mxu1 %v4244_v33  ;;  %3807 = vmatprep.subr.bf16.mxu0 %v4258_v51 }
 0x1f1   : > { %3845 = vmatprep.mubr.bf16.mxu1 %v4245_v44  ;;  %3890 = vmatpush3.bf16.msra.mxu1 %v4260_v53 }
 0x1f2   : > { %3891 = vmatprep.subr.bf16.mxu1 %v4262_v54 }
 0x1f3   : > { %3808 = vmatpush3.bf16.msra.mxu0 %v4258_v51 }
 0x1f4   : > { %3857 = vmatprep.subr.bf16.mxu0 %v4259_v52 }
 0x1f5   : > { %3892 = vmatpush3.bf16.msra.mxu1 %v4262_v54 }
 0x1f6   : > { %3893 = vmatprep.subr.bf16.mxu1 %v4264_v55 }
 0x1f8   : > { %3846 = vmatmul.mubr.bf16.gmra.mxu1 %v4246_v45 }
 0x1f9   : > { %3849 = vmatprep.mubr.bf16.mxu1 %v4247_v46  ;;  %3894 = vmatpush3.bf16.msra.mxu1 %v4264_v55  ;;  %v4271_v46 = vld [vmem:[%s4856_s26 + $0x88] sm:$0xff]  }
 0x1fa   : > { %3895 = vmatprep.subr.bf16.mxu1 %v4266_v56 }
 0x1fd   : > { %3896 = vmatpush3.bf16.msra.mxu1 %v4266_v56 }
 0x1fe   : > { %3897 = vmatprep.subr.bf16.mxu1 %v4268_v57 }
 0x200   : > { %3850 = vmatmul.mubr.bf16.gmra.mxu1 %v4248_v47 }
 0x201   : > { %3853 = vmatprep.mubr.bf16.mxu1 %v4249_v48  ;;  %3898 = vmatpush3.bf16.msra.mxu1 %v4268_v57 }
 0x202   : > { %3899 = vmatprep.subr.bf16.mxu1 %v4270_v58 }
 0x205   : > { %3900 = vmatpush3.bf16.msra.mxu1 %v4270_v58 }
 0x206   : > { %3901 = vmatprep.subr.bf16.mxu1 %v4272_v59 }
 0x208   : > { %3854 = vmatmul.mubr.bf16.gmra.mxu1 %v4250_v49 }
 0x209   : > { %3902 = vmatpush3.bf16.msra.mxu1 %v4272_v59 }
 0x20a   : > { %3903 = vmatprep.subr.bf16.mxu1 %v4274_v60 }
 0x20d   : > { %3904 = vmatpush3.bf16.msra.mxu1 %v4274_v60 }
 0x290   : > { %v4978_v63 = vpop.f32.mrf.mxu1 }
 0x292   : > { %v4980_v1 = vpop.f32.mrf.mxu1 }
 0x294   : > { %v4982_v3 = vpop.f32.mrf.mxu1 }
 0x296   : > { %v3747_v62 = vpop.f32.mrf.mxu0  ;;  %v4984_v5 = vpop.f32.mrf.mxu1 }
 0x298   : > { %v1208_v0 = vpop.f32.mrf.mxu0  ;;  %v4986_v9 = vpop.f32.mrf.mxu1 }
 0x29a   : > { %v3748_v2 = vpop.f32.mrf.mxu0  ;;  %v4989_v12 = vpop.f32.mrf.mxu1 }
 0x29b   : > { %v1272_v7 = vpack.c.bf16 %v3748_v2, %v3747_v62 }
 0x29c   : > { %v1211_v4 = vpop.f32.mrf.mxu0  ;;  %v4991_v15 = vpop.f32.mrf.mxu1 }
 0x29d   : > { %v1271_v6 = vpack.c.bf16 %v1211_v4, %v1208_v0 }
 0x29e   : > { %v3751_v8 = vpop.f32.mrf.mxu0  ;;  %v4994_v19 = vpop.f32.mrf.mxu1 }
 0x29f   : > { %3809 = vmatprep.mubr.bf16.mxu0 %v1271_v6 }
 0x2a0   : > { %v1224_v11 = vpop.f32.mrf.mxu0  ;;  %3810 = vmatmul.mubr.bf16.vlgmr.msra.gmra.mxu0 %v1272_v7  ;;  %v4996_v25 = vpop.f32.mrf.mxu1 }
 0x2a1   : > { %3858 = vmatpush3.bf16.msra.mxu0 %v4259_v52  ;;  %v4273_v52 = vld [vmem:[%s4856_s26 + $0x80] sm:$0xff]  }
 0x2a2   : > { %v3752_v13 = vpop.f32.mrf.mxu0  ;;  %3859 = vmatprep.subr.bf16.mxu0 %v4261_v10  ;;  %v4999_v29 = vpop.f32.mrf.mxu1 }
 0x2a3   : > { %v1274_v23 = vpack.c.bf16 %v3752_v13, %v3751_v8 }
 0x2a4   : > { %v1227_v17 = vpop.f32.mrf.mxu0  ;;  %v5001_v31 = vpop.f32.mrf.mxu1 }
 0x2a5   : > { %v1273_v22 = vpack.c.bf16 %v1227_v17, %v1224_v11  ;;  %3860 = vmatpush3.bf16.msra.mxu0 %v4261_v10 }
 0x2a6   : > { %v3755_v24 = vpop.f32.mrf.mxu0  ;;  %3861 = vmatprep.subr.bf16.mxu0 %v4263_v16  ;;  %v5004_v38 = vpop.f32.mrf.mxu1 }
 0x2a7   : > { %3813 = vmatprep.mubr.bf16.mxu0 %v1273_v22 }
 0x2a8   : > { %v1240_v27 = vpop.f32.mrf.mxu0  ;;  %3814 = vmatmul.mubr.bf16.gmra.mxu0 %v1274_v23  ;;  %v5006_v41 = vpop.f32.mrf.mxu1 }
 0x2a9   : > { %3862 = vmatpush3.bf16.msra.mxu0 %v4263_v16 }
 0x2aa   : > { %v3756_v30 = vpop.f32.mrf.mxu0  ;;  %3863 = vmatprep.subr.bf16.mxu0 %v4265_v26  ;;  %v5009_v33 = vpop.f32.mrf.mxu1 }
 0x2ab   : > { %v1276_v40 = vpack.c.bf16 %v3756_v30, %v3755_v24  ;;  %v4285_v30 = vld [vmem:[%s4856_s26 + $0x28] sm:$0xff]  }
 0x2ac   : > { %v1243_v37 = vpop.f32.mrf.mxu0  ;;  %v5011_v45 = vpop.f32.mrf.mxu1 }
 0x2ad   : > { %v1275_v39 = vpack.c.bf16 %v1243_v37, %v1240_v27  ;;  %3864 = vmatpush3.bf16.msra.mxu0 %v4265_v26  ;;  %v4281_v26 = vld [vmem:[#allocation10 + $0x30] sm:$0xff]   ;;  %v4282_v27 = vld [vmem:[#allocation10 + $0x38] sm:$0xff]  }
 0x2ae   : > { %v3759_v32 = vpop.f32.mrf.mxu0  ;;  %3865 = vmatprep.subr.bf16.mxu0 %v4267_v35  ;;  %v5014_v48 = vpop.f32.mrf.mxu1  ;;  %v4287_v37 = vld [vmem:[%s4856_s26 + $0x18] sm:$0xff]  }
 0x2af   : > { %3817 = vmatprep.mubr.bf16.mxu0 %v1275_v39  ;;  %v4288_v39 = vld [vmem:[%s4856_s26 + $0x10] sm:$0xff]  }
 0x2b0   : > { %v1256_v43 = vpop.f32.mrf.mxu0  ;;  %3818 = vmatmul.mubr.bf16.gmra.mxu0 %v1276_v40  ;;  %v3843_v51 = vpop.f32.mrf.mxu1  ;;  %v4289_v40 = vld [vmem:[%s4850_s20 + $0x38] sm:$0xff]  }
 0x2b1   : > { %3866 = vmatpush3.bf16.msra.mxu0 %v4267_v35  ;;  %v4286_v35 = vld [vmem:[%s4856_s26 + $0x20] sm:$0xff]  }
 0x2b2   : > { %v3760_v44 = vpop.f32.mrf.mxu0  ;;  %3867 = vmatprep.subr.bf16.mxu0 %v4269_v42  ;;  %v1726_v53 = vpop.f32.mrf.mxu1 }
 0x2b3   : > { %v1278_v50 = vpack.c.bf16 %v3760_v44, %v3759_v32  ;;  %v4290_v32 = vld [vmem:[%s4856_s26 + $0x8] sm:$0xff]  }
 0x2b4   : > { %v1259_v47 = vpop.f32.mrf.mxu0  ;;  %v3844_v54 = vpop.f32.mrf.mxu1  ;;  %v4293_v44 = vld [vmem:[%s4850_s20 + $0x28] sm:$0xff]  }
 0x2b5   : > { %v1277_v49 = vpack.c.bf16 %v1259_v47, %v1256_v43  ;;  %3868 = vmatpush3.bf16.msra.mxu0 %v4269_v42  ;;  %v1790_v55 = vpack.c.bf16 %v3844_v54, %v3843_v51  ;;  %v4291_v42 = vld [vmem:[%s4850_s20 + $0x30] sm:$0xff]   ;;  %v4292_v43 = vld [vmem:[%s4856_s26] sm:$0xff]   ;;  %v2226_v47 = vld [vmem:[#allocation2 + $0x58] sm:$0xff] }
 0x2b6   : > { %3869 = vmatprep.subr.bf16.mxu0 %v4271_v46  ;;  %v1729_v56 = vpop.f32.mrf.mxu1  ;;  %v2228_v51 = vld [vmem:[#allocation2 + $0xc8] sm:$0xff]  ;;  %v4295_v54 = vld [vmem:[%s4850_s20 + $0x18] sm:$0xff]  }
 0x2b7   : > { %3821 = vmatprep.mubr.bf16.mxu0 %v1277_v49  ;;  %v1789_v57 = vpack.c.bf16 %v1729_v56, %v1726_v53  ;;  %v4294_v53 = vld [vmem:[%s4850_s20 + $0x20] sm:$0xff]   ;;  %v2230_v56 = vld [vmem:[#allocation2 + $0x90] sm:$0xff] }
 0x2b8   : > { %3822 = vmatmul.mubr.bf16.gmra.mxu0 %v1278_v50  ;;  %v3847_v58 = vpop.f32.mrf.mxu1  ;;  %v2227_v50 = vld [vmem:[#allocation2 + $0x40] sm:$0xff] }
 0x2b9   : > { %3870 = vmatpush3.bf16.msra.mxu0 %v4271_v46  ;;  %3873 = vmatprep.mubr.bf16.mxu0 %v4918_v61  ;;  %v2225_v46 = vld [vmem:[#allocation2 + $0x38] sm:$0xff] }
 0x2ba   : > { %3871 = vmatprep.subr.bf16.mxu0 %v4273_v52  ;;  %3905 = vmatprep.mubr.bf16.mxu1 %v1789_v57  ;;  %v1742_v59 = vpop.f32.mrf.mxu1  ;;  %v2241_v49 = vpack.c.bf16 %v2226_v47, %v2225_v46  ;;  %v5076_v47 = vld [vmem:[%s4867_s22 + $0x2] ss:$0 sm:$0xff] }
 0x2bb   : > { %3906 = vmatmul.mubr.bf16.vlgmr.msra.gmra.mxu1 %v1790_v55  ;;  %v2229_v55 = vld [vmem:[#allocation2 + $0xe0] sm:$0xff] }
 0x2bc   : > { %v3848_v60 = vpop.f32.mrf.mxu1  ;;  %v2243_v57 = vpack.c.bf16 %v2230_v56, %v2229_v55 }
 0x2bd   : > { %3872 = vmatpush3.bf16.msra.mxu0 %v4273_v52  ;;  %v1792_v62 = vpack.c.bf16 %v3848_v60, %v3847_v58  ;;  %v2242_v52 = vpack.c.bf16 %v2228_v51, %v2227_v50  ;;  %v2231_v58 = vld [vmem:[#allocation2 + $0x70] sm:$0xff] }
 0x2be   : > { %3921 = vmatprep.subr.bf16.mxu0 %v4924_v14  ;;  %v1745_v0 = vpop.f32.mrf.mxu1 }
 0x2bf   : > { %v1791_v2 = vpack.c.bf16 %v1745_v0, %v1742_v59  ;;  %v2232_v59 = vld [vmem:[#allocation2 + $0xc0] sm:$0xff]  ;;  %v4297_v0 = vld [vmem:[%s4850_s20 + $0x8] sm:$0xff]  }
 0x2c0   : > { %3874 = vmatmul.mubr.bf16.vlgmr.msra.gmra.mxu0 %v4926_v18  ;;  %v3851_v4 = vpop.f32.mrf.mxu1  ;;  %v2244_v60 = vpack.c.bf16 %v2232_v59, %v2231_v58 }
 0x2c1   : > { %3922 = vmatpush3.bf16.msra.mxu0 %v4924_v14  ;;  %3877 = vmatprep.mubr.bf16.mxu0 %v4931_v21 }
 0x2c2   : > { %3923 = vmatprep.subr.bf16.mxu0 %v4929_v20  ;;  %3909 = vmatprep.mubr.bf16.mxu1 %v1791_v2  ;;  %v1758_v6 = vpop.f32.mrf.mxu1  ;;  %v2233_v2 = vld [vmem:[#allocation2 + $0xa8] sm:$0xff] }
 0x2c3   : > { %3910 = vmatmul.mubr.bf16.gmra.mxu1 %v1792_v62  ;;  %v4296_v62 = vld [vmem:[%s4850_s20 + $0x10] sm:$0xff]  }
 0x2c4   : > { %v3852_v7 = vpop.f32.mrf.mxu1 }
 0x2c5   : > { %3924 = vmatpush3.bf16.msra.mxu0 %v4929_v20  ;;  %v1794_v8 = vpack.c.bf16 %v3852_v7, %v3851_v4  ;;  %v2234_v4 = vld [vmem:[#allocation2 + $0xd0] sm:$0xff] }
 0x2c6   : > { %3925 = vmatprep.subr.bf16.mxu0 %v4939_v28  ;;  %v1761_v10 = vpop.f32.mrf.mxu1  ;;  %v2235_v7 = vld [vmem:[#allocation2 + $0x10] sm:$0xff] }
 0x2c7   : > { %v1793_v11 = vpack.c.bf16 %v1761_v10, %v1758_v6  ;;  %v2245_v6 = vpack.c.bf16 %v2234_v4, %v2233_v2 }
 0x2c8   : > { %3878 = vmatmul.mubr.bf16.gmra.mxu0 %v4941_v34  ;;  %v3855_v13 = vpop.f32.mrf.mxu1 }
 0x2c9   : > { %3926 = vmatpush3.bf16.msra.mxu0 %v4939_v28  ;;  %3881 = vmatprep.mubr.bf16.mxu0 %v4945_v36 }
 0x2ca   : > { %3927 = vmatprep.subr.bf16.mxu0 %v4945_v36  ;;  %3913 = vmatprep.mubr.bf16.mxu1 %v1793_v11  ;;  %v1774_v16 = vpop.f32.mrf.mxu1  ;;  %v4298_v11 = vld [vmem:[%s4850_s20] sm:$0xff]  }
 0x2cb   : > { %3914 = vmatmul.mubr.bf16.gmra.mxu1 %v1794_v8  ;;  %v2236_v8 = vld [vmem:[#allocation2 + $0x28] sm:$0xff] }
 0x2cc   : > { %v3856_v17 = vpop.f32.mrf.mxu1  ;;  %v2246_v10 = vpack.c.bf16 %v2236_v8, %v2235_v7 }
 0x2cd   : > { %3928 = vmatpush3.bf16.msra.mxu0 %v4945_v36  ;;  %v1796_v22 = vpack.c.bf16 %v3856_v17, %v3855_v13  ;;  %v4275_v36 = vld [vmem:[#allocation10] sm:$0xff]  }
 0x2ce   : > { %3929 = vmatprep.subr.bf16.mxu0 %v4941_v34  ;;  %v1777_v23 = vpop.f32.mrf.mxu1  ;;  %v2237_v13 = vld [vmem:[#allocation2 + $0xa0] sm:$0xff] }
 0x2cf   : > { %v1795_v24 = vpack.c.bf16 %v1777_v23, %v1774_v16  ;;  %v2238_v16 = vld [vmem:[#allocation2 + $0xf8] sm:$0xff] }
 0x2d0   : > { %3882 = vmatmul.mubr.bf16.gmra.mxu0 %v4939_v28  ;;  %v4277_v28 = vld [vmem:[#allocation10 + $0x10] sm:$0xff]   ;;  %v2247_v17 = vpack.c.bf16 %v2238_v16, %v2237_v13  ;;  %v2240_v23 = vld [vmem:[#allocation2 + $0x98] sm:$0xff] }
 0x2d1   : > { %3930 = vmatpush3.bf16.msra.mxu0 %v4941_v34  ;;  %3885 = vmatprep.mubr.bf16.mxu0 %v4929_v20  ;;  %v4276_v20 = vld [vmem:[#allocation10 + $0x8] sm:$0xff]   ;;  %v4279_v34 = vld [vmem:[#allocation10 + $0x20] sm:$0xff]  }
 0x2d2   : > { %3931 = vmatprep.subr.bf16.mxu0 %v4931_v21  ;;  %3917 = vmatprep.mubr.bf16.mxu1 %v1795_v24 }
 0x2d3   : > { %3918 = vmatmul.mubr.bf16.gmra.mxu1 %v1796_v22  ;;  %v2239_v22 = vld [vmem:[#allocation2 + $0x20] sm:$0xff] }
 0x2d4   : > { %3969 = vmatprep.mubr.bf16.mxu1 %v2241_v49  ;;  %v2248_v24 = vpack.c.bf16 %v2240_v23, %v2239_v22 }
 0x2d5   : > { %3932 = vmatpush3.bf16.msra.mxu0 %v4931_v21  ;;  %v4278_v21 = vld [vmem:[#allocation10 + $0x18] sm:$0xff]  }
 0x2d6   : > { %3933 = vmatprep.subr.bf16.mxu0 %v4926_v18 }
 0x2d8   : > { %3886 = vmatmul.mubr.bf16.gmra.mxu0 %v4924_v14  ;;  %v4280_v14 = vld [vmem:[#allocation10 + $0x28] sm:$0xff]  }
 0x2d9   : > { %3934 = vmatpush3.bf16.msra.mxu0 %v4926_v18  ;;  %3937 = vmatprep.mubr.bf16.mxu0 %v4275_v36  ;;  %v4283_v18 = vld [vmem:[%s4856_s26 + $0x38] sm:$0xff]  }
 0x2da   : > { %3935 = vmatprep.subr.bf16.mxu0 %v4918_v61  ;;  %3953 = vmatprep.subr.bf16.mxu1 %v4283_v18 }
 0x2db   : > { %3954 = vmatpush3.bf16.msra.mxu1 %v4283_v18 }
 0x2dd   : > { %3936 = vmatpush3.bf16.msra.mxu0 %v4918_v61  ;;  %v4284_v61 = vld [vmem:[%s4856_s26 + $0x30] sm:$0xff]  }
 0x2de   : > { %3955 = vmatprep.subr.bf16.mxu1 %v4284_v61  ;;  %3985 = vmatprep.subr.bf16.mxu0 %v4289_v40 }
 0x2df   : > { %3956 = vmatpush3.bf16.msra.mxu1 %v4284_v61 }
 0x2e0   : > { %3938 = vmatmul.mubr.bf16.vlgmr.msra.gmra.mxu0 %v4276_v20  ;;  %3957 = vmatprep.subr.bf16.mxu1 %v4285_v30 }
 0x2e1   : > { %3941 = vmatprep.mubr.bf16.mxu0 %v4277_v28  ;;  %3986 = vmatpush3.bf16.msra.mxu0 %v4289_v40 }
 0x2e2   : > { %3987 = vmatprep.subr.bf16.mxu0 %v4291_v42 }
 0x2e3   : > { %3958 = vmatpush3.bf16.msra.mxu1 %v4285_v30 }
 0x2e4   : > { %3959 = vmatprep.subr.bf16.mxu1 %v4286_v35 }
 0x2e5   : > { %3988 = vmatpush3.bf16.msra.mxu0 %v4291_v42 }
 0x2e6   : > { %3989 = vmatprep.subr.bf16.mxu0 %v4293_v44 }
 0x2e7   : > { %3960 = vmatpush3.bf16.msra.mxu1 %v4286_v35 }
 0x2e8   : > { %3942 = vmatmul.mubr.bf16.gmra.mxu0 %v4278_v21  ;;  %3961 = vmatprep.subr.bf16.mxu1 %v4287_v37 }
 0x2e9   : > { %3945 = vmatprep.mubr.bf16.mxu0 %v4279_v34  ;;  %3990 = vmatpush3.bf16.msra.mxu0 %v4293_v44 }
 0x2ea   : > { %3991 = vmatprep.subr.bf16.mxu0 %v4294_v53 }
 0x2eb   : > { %3962 = vmatpush3.bf16.msra.mxu1 %v4287_v37 }
 0x2ec   : > { %3963 = vmatprep.subr.bf16.mxu1 %v4288_v39 }
 0x2ed   : > { %3992 = vmatpush3.bf16.msra.mxu0 %v4294_v53 }
 0x2ee   : > { %3993 = vmatprep.subr.bf16.mxu0 %v4295_v54 }
 0x2ef   : > { %3964 = vmatpush3.bf16.msra.mxu1 %v4288_v39 }
 0x2f0   : > { %3946 = vmatmul.mubr.bf16.gmra.mxu0 %v4280_v14  ;;  %3965 = vmatprep.subr.bf16.mxu1 %v4290_v32 }
 0x2f1   : > { %3949 = vmatprep.mubr.bf16.mxu0 %v4281_v26  ;;  %3994 = vmatpush3.bf16.msra.mxu0 %v4295_v54 }
 0x2f2   : > { %3995 = vmatprep.subr.bf16.mxu0 %v4296_v62 }
 0x2f3   : > { %3966 = vmatpush3.bf16.msra.mxu1 %v4290_v32 }
 0x2f4   : > { %3967 = vmatprep.subr.bf16.mxu1 %v4292_v43 }
 0x2f5   : > { %3996 = vmatpush3.bf16.msra.mxu0 %v4296_v62 }
 0x2f6   : > { %3997 = vmatprep.subr.bf16.mxu0 %v4297_v0 }
 0x2f7   : > { %3968 = vmatpush3.bf16.msra.mxu1 %v4292_v43  ;;  %v5073_v43 = vld [vmem:[%s4867_s22 + $0x1] ss:$0 sm:$0xff] }
 0x2f8   : > { %3950 = vmatmul.mubr.bf16.gmra.mxu0 %v4282_v27  ;;  %4049 = vmatprep.subr.bf16.mxu1 %v4289_v40 }
 0x2f9   : > { %3998 = vmatpush3.bf16.msra.mxu0 %v4297_v0 }
 0x2fa   : > { %3970 = vmatmul.mubr.bf16.vlgmr.msra.gmra.mxu1 %v2242_v52  ;;  %3999 = vmatprep.subr.bf16.mxu0 %v4298_v11 }
 0x2fb   : > { %4057 = vmatpush3.bf16.msra.mxu1 %v4289_v40  ;;  %3973 = vmatprep.mubr.bf16.mxu1 %v2243_v57 }
 0x2fc   : > { %4050 = vmatprep.subr.bf16.mxu1 %v4291_v42 }
 0x2fd   : > { %4000 = vmatpush3.bf16.msra.mxu0 %v4298_v11 }
 0x2ff   : > { %4058 = vmatpush3.bf16.msra.mxu1 %v4291_v42 }
 0x300   : > { %4051 = vmatprep.subr.bf16.mxu1 %v4293_v44 }
 0x302   : > { %3974 = vmatmul.mubr.bf16.gmra.mxu1 %v2244_v60 }
 0x303   : > { %4059 = vmatpush3.bf16.msra.mxu1 %v4293_v44  ;;  %3977 = vmatprep.mubr.bf16.mxu1 %v2245_v6 }
 0x304   : > { %4052 = vmatprep.subr.bf16.mxu1 %v4294_v53 }
 0x307   : > { %4060 = vmatpush3.bf16.msra.mxu1 %v4294_v53 }
 0x308   : > { %4053 = vmatprep.subr.bf16.mxu1 %v4295_v54 }
 0x30a   : > { %3978 = vmatmul.mubr.bf16.gmra.mxu1 %v2246_v10 }
 0x30b   : > { %4061 = vmatpush3.bf16.msra.mxu1 %v4295_v54  ;;  %3981 = vmatprep.mubr.bf16.mxu1 %v2247_v17 }
 0x30c   : > { %4054 = vmatprep.subr.bf16.mxu1 %v4296_v62 }
 0x30f   : > { %4062 = vmatpush3.bf16.msra.mxu1 %v4296_v62 }
 0x310   : > { %4055 = vmatprep.subr.bf16.mxu1 %v4297_v0 }
 0x312   : > { %3982 = vmatmul.mubr.bf16.gmra.mxu1 %v2248_v24 }
 0x313   : > { %4063 = vmatpush3.bf16.msra.mxu1 %v4297_v0 }
 0x314   : > { %4056 = vmatprep.subr.bf16.mxu1 %v4298_v11 }
 0x317   : > { %4064 = vmatpush3.bf16.msra.mxu1 %v4298_v11 }
 0x360   : > { %v3811_v36 = vpop.f32.mrf.mxu0 }
 0x361   : > { %v1549_v42 = vadd.f32 %v3811_v36, %v4978_v63 }
 0x362   : > { %v1540_v20 = vpop.f32.mrf.mxu0 }
 0x363   : > { %v1541_v49 = vadd.f32 %v1540_v20, %v4980_v1  ;;  %v1613_v54 = vadd.f32 %v5073_v43, %v1549_v42 }
 0x364   : > { %v3812_v28 = vpop.f32.mrf.mxu0 }
 0x365   : > { %v1552_v51 = vadd.f32 %v3812_v28, %v4982_v3  ;;  %v1611_v59 = vadd.f32 %v5073_v43, %v1541_v49 }
 0x366   : > { %v1543_v21 = vpop.f32.mrf.mxu0 }
 0x367   : > { %v1544_v63 = vadd.f32 %v1543_v21, %v4984_v5  ;;  %v1614_v0 = vadd.f32 %v5073_v43, %v1552_v51 }
 0x368   : > { %v3815_v34 = vpop.f32.mrf.mxu0 }
 0x369   : > { %v1612_v8 = vadd.f32 %v5073_v43, %v1544_v63  ;;  %v1565_v5 = vadd.f32 %v3815_v34, %v4986_v9 }
 0x36a   : > { %v1556_v14 = vpop.f32.mrf.mxu0 }
 0x36b   : > { %v1557_v10 = vadd.f32 %v1556_v14, %v4989_v12  ;;  %v1617_v42 = vadd.f32 %v5073_v43, %v1565_v5 }
 0x36c   : > { %v3816_v26 = vpop.f32.mrf.mxu0 }
 0x36d   : > { %v1568_v24 = vadd.f32 %v3816_v26, %v4991_v15 }
 0x36e   : > { %v1559_v18 = vpop.f32.mrf.mxu0 }
 0x36f   : > { %v1560_v36 = vadd.f32 %v1559_v18, %v4994_v19 }
 0x370   : > { %v3819_v27 = vpop.f32.mrf.mxu0 }
 0x372   : > { %v5057_v61 = vpop.f32.mrf.mxu0 }
 0x374   : > { %v5059_v30 = vpop.f32.mrf.mxu0 }
 0x376   : > { %v5061_v35 = vpop.f32.mrf.mxu0 }
 0x378   : > { %v5063_v37 = vpop.f32.mrf.mxu0 }
 0x37a   : > { %v5065_v39 = vpop.f32.mrf.mxu0 }
 0x37b   : > { %v3907_v46 = vpop.f32.mrf.mxu1 }
 0x37c   : > { %v5067_v40 = vpop.f32.mrf.mxu0 }
 0x37d   : > { %v2058_v53 = vpop.f32.mrf.mxu1 }
 0x37e   : > { %v5069_v32 = vpop.f32.mrf.mxu0 }
 0x37f   : > { %v3908_v58 = vpop.f32.mrf.mxu1 }
 0x380   : > { %v3875_v44 = vpop.f32.mrf.mxu0 }
 0x381   : > { %v2067_v50 = vadd.f32 %v3907_v46, %v3875_v44  ;;  %v2061_v2 = vpop.f32.mrf.mxu1  ;;  %v1581_v44 = vadd.f32 %v3819_v27, %v4996_v25  ;;  %v1615_v46 = vadd.f32 %v5073_v43, %v1557_v10 }
 0x382   : > { %v1913_v52 = vpop.f32.mrf.mxu0 }
 0x383   : > { %v2131_v55 = vadd.f32 %v5076_v47, %v2067_v50  ;;  %v2059_v56 = vadd.f32 %v2058_v53, %v1913_v52  ;;  %v3911_v16 = vpop.f32.mrf.mxu1  ;;  %v1618_v52 = vadd.f32 %v5073_v43, %v1568_v24 }
 0x384   : > { %v3876_v57 = vpop.f32.mrf.mxu0 }
 0x385   : > { %v2147_v60 = vadd.f32 %v2131_v55, %v1613_v54  ;;  %v2129_v62 = vadd.f32 %v5076_v47, %v2059_v56  ;;  %v2070_v1 = vadd.f32 %v3908_v58, %v3876_v57  ;;  %v2074_v9 = vpop.f32.mrf.mxu1  ;;  %v1616_v55 = vadd.f32 %v5073_v43, %v1560_v36 }
 0x386   : > { %v1916_v3 = vpop.f32.mrf.mxu0  ;;  %v1621_v58 = vadd.f32 %v5073_v43, %v1581_v44 }
 0x387   : > { %vm2163_vm0 = vcmp.gt.f32.partialorder %v2147_v60, 0.0  ;;  %v2179_v4 = vmul.f32 0.01, %v2147_v60  ;;  %v2145_v6 = vadd.f32 %v2129_v62, %v1611_v59  ;;  %v2132_v7 = vadd.f32 %v5076_v47, %v2070_v1  ;;  %v3912_v18 = vpop.f32.mrf.mxu1 }
 0x388   : > { %v2062_v11 = vadd.f32 %v2061_v2, %v1916_v3  ;;  %v3879_v13 = vpop.f32.mrf.mxu0 }
 0x389   : > { %v2195_v17 = vsel %vm2163_vm0, %v2147_v60, %v2179_v4  ;;  %vm2161_vm1 = vcmp.gt.f32.partialorder %v2145_v6, 0.0  ;;  %v2177_v22 = vmul.f32 0.01, %v2145_v6  ;;  %v2148_v23 = vadd.f32 %v2132_v7, %v1614_v0  ;;  %v2077_v54 = vpop.f32.mrf.mxu1 }
 0x38a   : > { %2211 = vst [vmem:[#allocation3 + $0xe8] sm:$0xff] %v2195_v17  ;;  %2870 = vst [vmem:[#allocation2 + $0xd8] sm:$0xff] %v2195_v17  ;;  %v2130_v20 = vadd.f32 %v5076_v47, %v2062_v11  ;;  %v2083_v28 = vadd.f32 %v3911_v16, %v3879_v13  ;;  %v1929_v21 = vpop.f32.mrf.mxu0  ;;  %v1573_v4 = vadd.f32 %v5057_v61, %v4999_v29 }
 0x38b   : > { %v2193_v34 = vsel %vm2161_vm1, %v2145_v6, %v2177_v22  ;;  %vm2164_vm2 = vcmp.gt.f32.partialorder %v2148_v23, 0.0  ;;  %v2180_v12 = vmul.f32 0.01, %v2148_v23  ;;  %v2075_v14 = vadd.f32 %v2074_v9, %v1929_v21  ;;  %v3915_v1 = vpop.f32.mrf.mxu1 }
 0x38c   : > { %2209 = vst [vmem:[#allocation3 + $0x80] sm:$0xff] %v2193_v34  ;;  %2868 = vst [vmem:[#allocation2 + $0xb0] sm:$0xff] %v2193_v34  ;;  %v2146_v15 = vadd.f32 %v2130_v20, %v1612_v8  ;;  %v2135_v19 = vadd.f32 %v5076_v47, %v2083_v28  ;;  %v3880_v26 = vpop.f32.mrf.mxu0  ;;  %v1584_v6 = vadd.f32 %v5059_v30, %v5001_v31 }
 0x38d   : > { %v2196_v49 = vsel %vm2164_vm2, %v2148_v23, %v2180_v12  ;;  %v2133_v50 = vadd.f32 %v5076_v47, %v2075_v14  ;;  %v2086_v51 = vadd.f32 %v3912_v18, %v3880_v26  ;;  %v2090_v10 = vpop.f32.mrf.mxu1  ;;  %v1576_v17 = vadd.f32 %v5061_v35, %v5004_v38 }
 0x38e   : > { %2212 = vst [vmem:[#allocation3 + $0x78] sm:$0xff] %v2196_v49  ;;  %2871 = vst [vmem:[#allocation2 + $0x18] sm:$0xff] %v2196_v49  ;;  %vm2162_vm3 = vcmp.gt.f32.partialorder %v2146_v15, 0.0  ;;  %v2178_v53 = vmul.f32 0.01, %v2146_v15  ;;  %v2151_v25 = vadd.f32 %v2135_v19, %v1617_v42  ;;  %v1932_v27 = vpop.f32.mrf.mxu0  ;;  %v1597_v22 = vadd.f32 %v5063_v37, %v5006_v41 }
 0x38f   : > { %v2149_v56 = vadd.f32 %v2133_v50, %v1615_v46  ;;  %v2136_v63 = vadd.f32 %v5076_v47, %v2086_v51  ;;  %v2078_v57 = vadd.f32 %v2077_v54, %v1932_v27  ;;  %v3916_v30 = vpop.f32.mrf.mxu1  ;;  %v1619_v20 = vadd.f32 %v5073_v43, %v1573_v4 }
 0x390   : > { %v2194_v59 = vsel %vm2162_vm3, %v2146_v15, %v2178_v53  ;;  %vm2167_vm4 = vcmp.gt.f32.partialorder %v2151_v25, 0.0  ;;  %v2183_v60 = vmul.f32 0.01, %v2151_v25  ;;  %v3883_v62 = vpop.f32.mrf.mxu0  ;;  %v1622_v37 = vadd.f32 %v5073_v43, %v1584_v6 }
 0x391   : > { %2210 = vst [vmem:[#allocation3 + $0xc8] sm:$0xff] %v2194_v59  ;;  %2869 = vst [vmem:[#allocation2] sm:$0xff] %v2194_v59  ;;  %vm2165_vm5 = vcmp.gt.f32.partialorder %v2149_v56, 0.0  ;;  %v2181_v0 = vmul.f32 0.01, %v2149_v56  ;;  %v2152_v3 = vadd.f32 %v2136_v63, %v1618_v52  ;;  %v2134_v2 = vadd.f32 %v5076_v47, %v2078_v57  ;;  %v2093_v41 = vpop.f32.mrf.mxu1 }
 0x392   : > { %v2199_v7 = vsel %vm2167_vm4, %v2151_v25, %v2183_v60  ;;  %v2099_v8 = vadd.f32 %v3915_v1, %v3883_v62  ;;  %v1945_v5 = vpop.f32.mrf.mxu0  ;;  %v1620_v12 = vadd.f32 %v5073_v43, %v1576_v17  ;;  %v1625_v19 = vadd.f32 %v5073_v43, %v1597_v22 }
 0x393   : > { %2215 = vst [vmem:[#allocation3 + $0x58] sm:$0xff] %v2199_v7  ;;  %2874 = vst [vmem:[#allocation2 + $0x30] sm:$0xff] %v2199_v7  ;;  %v2197_v11 = vsel %vm2165_vm5, %v2149_v56, %v2181_v0  ;;  %vm2168_vm6 = vcmp.gt.f32.partialorder %v2152_v3, 0.0  ;;  %v2184_v13 = vmul.f32 0.01, %v2152_v3  ;;  %v2150_v16 = vadd.f32 %v2134_v2, %v1616_v55  ;;  %v3919_v15 = vpop.f32.mrf.mxu1 }
 0x394   : > { %2213 = vst [vmem:[#allocation3 + $0x8] sm:$0xff] %v2197_v11  ;;  %2872 = vst [vmem:[#allocation2 + $0x50] sm:$0xff] %v2197_v11  ;;  %v2139_v29 = vadd.f32 %v5076_v47, %v2099_v8  ;;  %v2091_v31 = vadd.f32 %v2090_v10, %v1945_v5  ;;  %v3884_v61 = vpop.f32.mrf.mxu0  ;;  %v1589_v49 = vadd.f32 %v5065_v39, %v5009_v33 }
 0x395   : > { %v2200_v23 = vsel %vm2168_vm6, %v2152_v3, %v2184_v13  ;;  %vm2166_vm7 = vcmp.gt.f32.partialorder %v2150_v16, 0.0  ;;  %v2182_v24 = vmul.f32 0.01, %v2150_v16  ;;  %v2102_v36 = vadd.f32 %v3916_v30, %v3884_v61  ;;  %v2106_v53 = vpop.f32.mrf.mxu1 }
 0x396   : > { %2216 = vst [vmem:[#allocation3 + $0xa8] sm:$0xff] %v2200_v23  ;;  %2875 = vst [vmem:[#allocation2 + $0x48] sm:$0xff] %v2200_v23  ;;  %v2155_v28 = vadd.f32 %v2139_v29, %v1621_v58  ;;  %v2137_v38 = vadd.f32 %v5076_v47, %v2091_v31  ;;  %v1948_v35 = vpop.f32.mrf.mxu0  ;;  %v1600_v55 = vadd.f32 %v5067_v40, %v5011_v45 }
 0x397   : > { %v2198_v21 = vsel %vm2166_vm7, %v2150_v16, %v2182_v24  ;;  %v2140_v9 = vadd.f32 %v5076_v47, %v2102_v36  ;;  %v2094_v34 = vadd.f32 %v2093_v41, %v1948_v35  ;;  %v1592_v56 = vadd.f32 %v5069_v32, %v5014_v48  ;;  %v3920_v57 = vpop.f32.mrf.mxu1 }
 0x398   : > { %2214 = vst [vmem:[#allocation3 + $0x90] sm:$0xff] %v2198_v21  ;;  %2873 = vst [vmem:[#allocation2 + $0x68] sm:$0xff] %v2198_v21  ;;  %vm2171_vm8 = vcmp.gt.f32.partialorder %v2155_v28, 0.0  ;;  %v2187_v14 = vmul.f32 0.01, %v2155_v28  ;;  %v2153_v42 = vadd.f32 %v2137_v38, %v1619_v20  ;;  %v3887_v44 = vpop.f32.mrf.mxu0  ;;  %v1623_v62 = vadd.f32 %v5073_v43, %v1589_v49 }
 0x399   : > { %v2156_v26 = vadd.f32 %v2140_v9, %v1622_v37  ;;  %v2138_v18 = vadd.f32 %v5076_v47, %v2094_v34  ;;  %v2115_v46 = vadd.f32 %v3919_v15, %v3887_v44  ;;  %v2109_v0 = vpop.f32.mrf.mxu1  ;;  %v1626_v2 = vadd.f32 %v5073_v43, %v1600_v55 }
 0x39a   : > { %v2203_v50 = vsel %vm2171_vm8, %v2155_v28, %v2187_v14  ;;  %vm2169_vm9 = vcmp.gt.f32.partialorder %v2153_v42, 0.0  ;;  %v2185_v51 = vmul.f32 0.01, %v2153_v42  ;;  %v1961_v52 = vpop.f32.mrf.mxu0  ;;  %v1624_v8 = vadd.f32 %v5073_v43, %v1592_v56 }
 0x39b   : > { %2219 = vst [vmem:[#allocation3 + $0x38] sm:$0xff] %v2203_v50  ;;  %2878 = vst [vmem:[#allocation2 + $0xe8] sm:$0xff] %v2203_v50  ;;  %vm2172_vm10 = vcmp.gt.f32.partialorder %v2156_v26, 0.0  ;;  %v2188_v25 = vmul.f32 0.01, %v2156_v26  ;;  %v2154_v27 = vadd.f32 %v2138_v18, %v1620_v12  ;;  %v2143_v54 = vadd.f32 %v5076_v47, %v2115_v46 }
 0x39c   : > { %v2201_v63 = vsel %vm2169_vm9, %v2153_v42, %v2185_v51  ;;  %v2107_v33 = vadd.f32 %v2106_v53, %v1961_v52  ;;  %v3888_v39 = vpop.f32.mrf.mxu0 }
 0x39d   : > { %2217 = vst [vmem:[#allocation3 + $0xd0] sm:$0xff] %v2201_v63  ;;  %2876 = vst [vmem:[#allocation2 + $0x80] sm:$0xff] %v2201_v63  ;;  %v2204_v58 = vsel %vm2172_vm10, %v2156_v26, %v2188_v25  ;;  %vm2170_vm11 = vcmp.gt.f32.partialorder %v2154_v27, 0.0  ;;  %v2186_v59 = vmul.f32 0.01, %v2154_v27  ;;  %v2159_v60 = vadd.f32 %v2143_v54, %v1625_v19 }
 0x39e   : > { %2220 = vst [vmem:[#allocation3 + $0x40] sm:$0xff] %v2204_v58  ;;  %2879 = vst [vmem:[#allocation2 + $0xb8] sm:$0xff] %v2204_v58  ;;  %v2141_v1 = vadd.f32 %v5076_v47, %v2107_v33  ;;  %v2118_v45 = vadd.f32 %v3920_v57, %v3888_v39  ;;  %v1964_v40 = vpop.f32.mrf.mxu0  ;;  %v5139_v39 = vld [vmem:[%s4867_s22] ss:$0 sm:$0xff] }
 0x39f   : > { %v2202_v48 = vsel %vm2170_vm11, %v2154_v27, %v2186_v59  ;;  %vm2175_vm12 = vcmp.gt.f32.partialorder %v2159_v60, 0.0  ;;  %v2191_v32 = vmul.f32 0.01, %v2159_v60  ;;  %v2110_v3 = vadd.f32 %v2109_v0, %v1964_v40 }
 0x3a0   : > { %2218 = vst [vmem:[#allocation3 + $0xb0] sm:$0xff] %v2202_v48  ;;  %2877 = vst [vmem:[#allocation2 + $0x88] sm:$0xff] %v2202_v48  ;;  %v2157_v4 = vadd.f32 %v2141_v1, %v1623_v62  ;;  %v2144_v6 = vadd.f32 %v5076_v47, %v2118_v45  ;;  %v3939_v7 = vpop.f32.mrf.mxu0 }
 0x3a1   : > { %v2207_v5 = vsel %vm2175_vm12, %v2159_v60, %v2191_v32  ;;  %v2142_v10 = vadd.f32 %v5076_v47, %v2110_v3 }
 0x3a2   : > { %2223 = vst [vmem:[#allocation3 + $0x18] sm:$0xff] %v2207_v5  ;;  %2882 = vst [vmem:[#allocation2 + $0x8] sm:$0xff] %v2207_v5  ;;  %vm2173_vm13 = vcmp.gt.f32.partialorder %v2157_v4, 0.0  ;;  %v2189_v11 = vmul.f32 0.01, %v2157_v4  ;;  %v2160_v13 = vadd.f32 %v2144_v6, %v1626_v2  ;;  %v2371_v16 = vpop.f32.mrf.mxu0 }
 0x3a3   : > { %v2158_v17 = vadd.f32 %v2142_v10, %v1624_v8 }
 0x3a4   : > { %v2205_v22 = vsel %vm2173_vm13, %v2157_v4, %v2189_v11  ;;  %vm2176_vm14 = vcmp.gt.f32.partialorder %v2160_v13, 0.0  ;;  %v2192_v29 = vmul.f32 0.01, %v2160_v13  ;;  %v3940_v31 = vpop.f32.mrf.mxu0 }
 0x3a5   : > { %2221 = vst [vmem:[#allocation3 + $0xe0] sm:$0xff] %v2205_v22  ;;  %2880 = vst [vmem:[#allocation2 + $0x60] sm:$0xff] %v2205_v22  ;;  %vm2174_vm15 = vcmp.gt.f32.partialorder %v2158_v17, 0.0  ;;  %v2190_v61 = vmul.f32 0.01, %v2158_v17  ;;  %v2435_v24 = vpack.c.bf16 %v3940_v31, %v3939_v7 }
 0x3a6   : > { %v2208_v30 = vsel %vm2176_vm14, %v2160_v13, %v2192_v29  ;;  %v2374_v43 = vpop.f32.mrf.mxu0 }
 0x3a7   : > { %2224 = vst [vmem:[#allocation3 + $0x68] sm:$0xff] %v2208_v30  ;;  %2883 = vst [vmem:[#allocation2 + $0x78] sm:$0xff] %v2208_v30  ;;  %v2206_v47 = vsel %vm2174_vm15, %v2158_v17, %v2190_v61  ;;  %v2434_v23 = vpack.c.bf16 %v2374_v43, %v2371_v16 }
 0x3a8   : > { %2222 = vst [vmem:[#allocation3 + $0x60] sm:$0xff] %v2206_v47  ;;  %2881 = vst [vmem:[#allocation2 + $0xf0] sm:$0xff] %v2206_v47  ;;  %v3943_v36 = vpop.f32.mrf.mxu0 }
 0x3a9   : > { %4001 = vmatprep.mubr.bf16.mxu0 %v2434_v23 }
 0x3aa   : > { %v2387_v20 = vpop.f32.mrf.mxu0  ;;  %4002 = vmatmul.mubr.bf16.vlgmr.msra.gmra.mxu0 %v2435_v24 }
 0x3ac   : > { %v3944_v28 = vpop.f32.mrf.mxu0 }
 0x3ad   : > { %v2437_v41 = vpack.c.bf16 %v3944_v28, %v3943_v36 }
 0x3ae   : > { %v2390_v38 = vpop.f32.mrf.mxu0 }
 0x3af   : > { %v2436_v35 = vpack.c.bf16 %v2390_v38, %v2387_v20 }
 0x3b0   : > { %v3947_v37 = vpop.f32.mrf.mxu0 }
 0x3b1   : > { %4005 = vmatprep.mubr.bf16.mxu0 %v2436_v35 }
 0x3b2   : > { %v2403_v21 = vpop.f32.mrf.mxu0  ;;  %4006 = vmatmul.mubr.bf16.gmra.mxu0 %v2437_v41 }
 0x3b4   : > { %v3948_v9 = vpop.f32.mrf.mxu0 }
 0x3b5   : > { %v2439_v14 = vpack.c.bf16 %v3948_v9, %v3947_v37 }
 0x3b6   : > { %v2406_v34 = vpop.f32.mrf.mxu0 }
 0x3b7   : > { %v2438_v12 = vpack.c.bf16 %v2406_v34, %v2403_v21 }
 0x3b8   : > { %v3951_v42 = vpop.f32.mrf.mxu0 }
 0x3b9   : > { %4009 = vmatprep.mubr.bf16.mxu1 %v2438_v12 }
 0x3ba   : > { %v2419_v44 = vpop.f32.mrf.mxu0  ;;  %4010 = vmatmul.mubr.bf16.vlgmr.msra.gmra.mxu1 %v2439_v14  ;;  %v3971_v46 = vpop.f32.mrf.mxu1 }
 0x3bc   : > { %v3952_v15 = vpop.f32.mrf.mxu0  ;;  %v2556_v49 = vpop.f32.mrf.mxu1 }
 0x3bd   : > { %v2441_v18 = vpack.c.bf16 %v3952_v15, %v3951_v42 }
 0x3be   : > { %v2422_v19 = vpop.f32.mrf.mxu0  ;;  %v3972_v50 = vpop.f32.mrf.mxu1 }
 0x3bf   : > { %v2440_v26 = vpack.c.bf16 %v2422_v19, %v2419_v44 }
 0x3c0   : > { %v2559_v51 = vpop.f32.mrf.mxu1 }
 0x3c1   : > { %4013 = vmatprep.mubr.bf16.mxu1 %v2440_v26 }
 0x3c2   : > { %4014 = vmatmul.mubr.bf16.gmra.mxu1 %v2441_v18  ;;  %v3975_v52 = vpop.f32.mrf.mxu1 }
 0x3c4   : > { %v2572_v53 = vpop.f32.mrf.mxu1 }
 0x3c6   : > { %v3976_v25 = vpop.f32.mrf.mxu1 }
 0x3c8   : > { %v2575_v27 = vpop.f32.mrf.mxu1 }
 0x3ca   : > { %v3979_v54 = vpop.f32.mrf.mxu1 }
 0x3cc   : > { %v5132_v55 = vpop.f32.mrf.mxu1 }
 0x3ce   : > { %v5134_v56 = vpop.f32.mrf.mxu1 }
 0x3d0   : > { %v5136_v63 = vpop.f32.mrf.mxu1 }
 0x3d2   : > { %v5141_v58 = vpop.f32.mrf.mxu1 }
 0x3d4   : > { %v5145_v48 = vpop.f32.mrf.mxu1 }
 0x3d6   : > { %v5148_v11 = vpop.f32.mrf.mxu1 }
 0x3d8   : > { %v5153_v24 = vpop.f32.mrf.mxu1 }
 0x46a   : > { %v4003_v33 = vpop.f32.mrf.mxu0 }
 0x46b   : > { %v2710_v57 = vadd.f32 %v4003_v33, %v3971_v46 }
 0x46c   : > { %v2701_v59 = vpop.f32.mrf.mxu0 }
 0x46d   : > { %v2773_v60 = vadd.f32 %v5139_v39, %v2710_v57  ;;  %v2702_v62 = vadd.f32 %v2701_v59, %v2556_v49 }
 0x46e   : > { %v4004_v1 = vpop.f32.mrf.mxu0 }
 0x46f   : > { %vm2789_vm0 = vcmp.gt.f32.partialorder %v2773_v60, 0.0  ;;  %v2805_v45 = vmul.f32 0.01, %v2773_v60  ;;  %v2771_v40 = vadd.f32 %v5139_v39, %v2702_v62  ;;  %v2713_v0 = vadd.f32 %v4004_v1, %v3972_v50 }
 0x470   : > { %v2704_v32 = vpop.f32.mrf.mxu0 }
 0x471   : > { %v2821_v3 = vsel %vm2789_vm0, %v2773_v60, %v2805_v45  ;;  %vm2787_vm1 = vcmp.gt.f32.partialorder %v2771_v40, 0.0  ;;  %v2803_v2 = vmul.f32 0.01, %v2771_v40  ;;  %v2774_v4 = vadd.f32 %v5139_v39, %v2713_v0 }
 0x472   : > { %2902 = vst [vmem:[#allocation2 + $0x40] sm:$0xff] %v2821_v3  ;;  %v2705_v6 = vadd.f32 %v2704_v32, %v2559_v51  ;;  %v4007_v7 = vpop.f32.mrf.mxu0 }
 0x473   : > { %v2819_v8 = vsel %vm2787_vm1, %v2771_v40, %v2803_v2  ;;  %vm2790_vm2 = vcmp.gt.f32.partialorder %v2774_v4, 0.0  ;;  %v2806_v5 = vmul.f32 0.01, %v2774_v4  ;;  %v2726_v10 = vadd.f32 %v4007_v7, %v3975_v52 }
 0x474   : > { %2900 = vst [vmem:[#allocation2 + $0x38] sm:$0xff] %v2819_v8  ;;  %v2772_v13 = vadd.f32 %v5139_v39, %v2705_v6  ;;  %v2717_v16 = vpop.f32.mrf.mxu0 }
 0x475   : > { %v2822_v17 = vsel %vm2790_vm2, %v2774_v4, %v2806_v5  ;;  %v2777_v22 = vadd.f32 %v5139_v39, %v2726_v10  ;;  %v2718_v29 = vadd.f32 %v2717_v16, %v2572_v53 }
 0x476   : > { %2903 = vst [vmem:[#allocation2 + $0xc8] sm:$0xff] %v2822_v17  ;;  %vm2788_vm3 = vcmp.gt.f32.partialorder %v2772_v13, 0.0  ;;  %v2804_v31 = vmul.f32 0.01, %v2772_v13  ;;  %v4008_v61 = vpop.f32.mrf.mxu0 }
 0x477   : > { %vm2793_vm4 = vcmp.gt.f32.partialorder %v2777_v22, 0.0  ;;  %v2809_v30 = vmul.f32 0.01, %v2777_v22  ;;  %v2775_v43 = vadd.f32 %v5139_v39, %v2718_v29  ;;  %v2729_v47 = vadd.f32 %v4008_v61, %v3976_v25 }
 0x478   : > { %v2820_v23 = vsel %vm2788_vm3, %v2772_v13, %v2804_v31  ;;  %v2720_v36 = vpop.f32.mrf.mxu0 }
 0x479   : > { %2901 = vst [vmem:[#allocation2 + $0x58] sm:$0xff] %v2820_v23  ;;  %v2825_v20 = vsel %vm2793_vm4, %v2777_v22, %v2809_v30  ;;  %vm2791_vm5 = vcmp.gt.f32.partialorder %v2775_v43, 0.0  ;;  %v2807_v28 = vmul.f32 0.01, %v2775_v43  ;;  %v2778_v38 = vadd.f32 %v5139_v39, %v2729_v47 }
 0x47a   : > { %2906 = vst [vmem:[#allocation2 + $0x70] sm:$0xff] %v2825_v20  ;;  %v2721_v35 = vadd.f32 %v2720_v36, %v2575_v27  ;;  %v4011_v41 = vpop.f32.mrf.mxu1 }
 0x47b   : > { %v2823_v37 = vsel %vm2791_vm5, %v2775_v43, %v2807_v28  ;;  %vm2794_vm6 = vcmp.gt.f32.partialorder %v2778_v38, 0.0  ;;  %v2810_v21 = vmul.f32 0.01, %v2778_v38  ;;  %v2742_v9 = vadd.f32 %v4011_v41, %v3979_v54 }
 0x47c   : > { %2904 = vst [vmem:[#allocation2 + $0xe0] sm:$0xff] %v2823_v37  ;;  %v2776_v34 = vadd.f32 %v5139_v39, %v2721_v35  ;;  %v2733_v12 = vpop.f32.mrf.mxu1 }
 0x47d   : > { %v2826_v14 = vsel %vm2794_vm6, %v2778_v38, %v2810_v21  ;;  %v2781_v42 = vadd.f32 %v5139_v39, %v2742_v9  ;;  %v2734_v44 = vadd.f32 %v2733_v12, %v5132_v55 }
 0x47e   : > { %2907 = vst [vmem:[#allocation2 + $0xc0] sm:$0xff] %v2826_v14  ;;  %vm2792_vm7 = vcmp.gt.f32.partialorder %v2776_v34, 0.0  ;;  %v2808_v15 = vmul.f32 0.01, %v2776_v34  ;;  %v4012_v19 = vpop.f32.mrf.mxu1 }
 0x47f   : > { %vm2797_vm8 = vcmp.gt.f32.partialorder %v2781_v42, 0.0  ;;  %v2813_v26 = vmul.f32 0.01, %v2781_v42  ;;  %v2779_v18 = vadd.f32 %v5139_v39, %v2734_v44  ;;  %v2745_v46 = vadd.f32 %v4012_v19, %v5134_v56 }
 0x480   : > { %v2824_v49 = vsel %vm2792_vm7, %v2776_v34, %v2808_v15  ;;  %v2736_v50 = vpop.f32.mrf.mxu1 }
 0x481   : > { %2905 = vst [vmem:[#allocation2 + $0x90] sm:$0xff] %v2824_v49  ;;  %v2829_v51 = vsel %vm2797_vm8, %v2781_v42, %v2813_v26  ;;  %vm2795_vm9 = vcmp.gt.f32.partialorder %v2779_v18, 0.0  ;;  %v2811_v52 = vmul.f32 0.01, %v2779_v18  ;;  %v2782_v53 = vadd.f32 %v5139_v39, %v2745_v46 }
 0x482   : > { %2910 = vst [vmem:[#allocation2 + $0x10] sm:$0xff] %v2829_v51  ;;  %v2737_v25 = vadd.f32 %v2736_v50, %v5136_v63  ;;  %v4015_v27 = vpop.f32.mrf.mxu1 }
 0x483   : > { %v2827_v54 = vsel %vm2795_vm9, %v2779_v18, %v2811_v52  ;;  %vm2798_vm10 = vcmp.gt.f32.partialorder %v2782_v53, 0.0  ;;  %v2814_v55 = vmul.f32 0.01, %v2782_v53  ;;  %v2758_v33 = vadd.f32 %v4015_v27, %v5141_v58 }
 0x484   : > { %2908 = vst [vmem:[#allocation2 + $0xa8] sm:$0xff] %v2827_v54  ;;  %v2780_v56 = vadd.f32 %v5139_v39, %v2737_v25  ;;  %v2749_v57 = vpop.f32.mrf.mxu1 }
 0x485   : > { %v2830_v59 = vsel %vm2798_vm10, %v2782_v53, %v2814_v55  ;;  %v2785_v60 = vadd.f32 %v5139_v39, %v2758_v33  ;;  %v2750_v62 = vadd.f32 %v2749_v57, %v5145_v48 }
 0x486   : > { %2911 = vst [vmem:[#allocation2 + $0x28] sm:$0xff] %v2830_v59  ;;  %vm2796_vm11 = vcmp.gt.f32.partialorder %v2780_v56, 0.0  ;;  %v2812_v1 = vmul.f32 0.01, %v2780_v56  ;;  %v4016_v45 = vpop.f32.mrf.mxu1 }
 0x487   : > { %vm2801_vm12 = vcmp.gt.f32.partialorder %v2785_v60, 0.0  ;;  %v2817_v63 = vmul.f32 0.01, %v2785_v60  ;;  %v2783_v40 = vadd.f32 %v5139_v39, %v2750_v62  ;;  %v2761_v0 = vadd.f32 %v4016_v45, %v5148_v11 }
 0x488   : > { %v2828_v58 = vsel %vm2796_vm11, %v2780_v56, %v2812_v1  ;;  %v2752_v32 = vpop.f32.mrf.mxu1 }
 0x489   : > { %2909 = vst [vmem:[#allocation2 + $0xd0] sm:$0xff] %v2828_v58  ;;  %v2833_v3 = vsel %vm2801_vm12, %v2785_v60, %v2817_v63  ;;  %vm2799_vm13 = vcmp.gt.f32.partialorder %v2783_v40, 0.0  ;;  %v2815_v2 = vmul.f32 0.01, %v2783_v40  ;;  %v2786_v4 = vadd.f32 %v5139_v39, %v2761_v0 }
 0x48a   : > { %2914 = vst [vmem:[#allocation2 + $0x20] sm:$0xff] %v2833_v3  ;;  %v2753_v48 = vadd.f32 %v2752_v32, %v5153_v24 }
 0x48b   : > { %v2831_v6 = vsel %vm2799_vm13, %v2783_v40, %v2815_v2  ;;  %vm2802_vm14 = vcmp.gt.f32.partialorder %v2786_v4, 0.0  ;;  %v2818_v7 = vmul.f32 0.01, %v2786_v4 }
 0x48c   : > { %2912 = vst [vmem:[#allocation2 + $0xa0] sm:$0xff] %v2831_v6  ;;  %v2784_v8 = vadd.f32 %v5139_v39, %v2753_v48 }
 0x48d   : > { %v2834_v5 = vsel %vm2802_vm14, %v2786_v4, %v2818_v7  ;;  %2919 = sbr.rel (%p3459_p9) target bundleno = 1413 (0x585), region = 96 }
 0x48e   : > { %2915 = vst [vmem:[#allocation2 + $0x98] sm:$0xff] %v2834_v5  ;;  %vm2800_vm15 = vcmp.gt.f32.partialorder %v2784_v8, 0.0  ;;  %v2816_v10 = vmul.f32 0.01, %v2784_v8 }
 0x490   : > { %v2832_v11 = vsel %vm2800_vm15, %v2784_v8, %v2816_v10 }
 0x491   : > { %2913 = vst [vmem:[#allocation2 + $0xf8] sm:$0xff] %v2832_v11 }
 0x492   : > { %v4299_v13 = vld [vmem:[#allocation14 + $0x38] sm:$0xff]   ;;  %v4300_v16 = vld [vmem:[#allocation14 + $0x30] sm:$0xff]   ;;  %v4301_v17 = vld [vmem:[#allocation14 + $0x28] sm:$0xff]  }
 0x493   : > { %4017 = vmatprep.subr.bf16.mxu0 %v4299_v13  ;;  %4065 = vmatprep.subr.bf16.mxu1 %v4299_v13  ;;  %v4302_v39 = vld [vmem:[#allocation14 + $0x20] sm:$0xff]   ;;  %v2921_v29 = vld [vmem:[#allocation3 + $0xc8] sm:$0xff]  ;;  %v2928_v31 = vld [vmem:[#allocation3 + $0xd0] sm:$0xff] }
 0x494   : > { %4018 = vmatpush3.bf16.msra.mxu0 %v4299_v13  ;;  %4073 = vmatpush3.bf16.msra.mxu1 %v4299_v13  ;;  %v2920_v22 = vld [vmem:[#allocation3 + $0x80] sm:$0xff]  ;;  %v2929_v30 = vld [vmem:[#allocation3 + $0xb0] sm:$0xff]  ;;  %v4303_v47 = vld [vmem:[#allocation14 + $0x18] sm:$0xff]  }
 0x495   : > { %4019 = vmatprep.subr.bf16.mxu0 %v4300_v16  ;;  %4066 = vmatprep.subr.bf16.mxu1 %v4300_v16  ;;  %v2936_v61 = vpack.c.bf16 %v2921_v29, %v2920_v22  ;;  %v2940_v43 = vpack.c.bf16 %v2929_v30, %v2928_v31  ;;  %v4304_v23 = vld [vmem:[#allocation14 + $0x10] sm:$0xff]   ;;  %v4305_v24 = vld [vmem:[#allocation14 + $0x8] sm:$0xff]   ;;  %v4306_v36 = vld [vmem:[#allocation14] sm:$0xff]  }
 0x496   : > { %v2922_v20 = vld [vmem:[#allocation3 + $0xe8] sm:$0xff]  ;;  %v2923_v28 = vld [vmem:[#allocation3 + $0x78] sm:$0xff]  ;;  %v2931_v35 = vld [vmem:[#allocation3 + $0x40] sm:$0xff] }
 0x497   : > { %4033 = vmatprep.mubr.bf16.mxu0 %v2936_v61  ;;  %4041 = vmatprep.mubr.bf16.mxu1 %v2940_v43  ;;  %v2930_v38 = vld [vmem:[#allocation3 + $0x38] sm:$0xff]  ;;  %v2924_v41 = vld [vmem:[#allocation3 + $0x8] sm:$0xff]  ;;  %v2925_v37 = vld [vmem:[#allocation3 + $0x90] sm:$0xff]  ;;  %v2937_v34 = vpack.c.bf16 %v2923_v28, %v2922_v20 }
 0x498   : > { %4020 = vmatpush3.bf16.msra.mxu0 %v4300_v16  ;;  %4074 = vmatpush3.bf16.msra.mxu1 %v4300_v16  ;;  %v2932_v21 = vld [vmem:[#allocation3 + $0xe0] sm:$0xff]  ;;  %v2941_v12 = vpack.c.bf16 %v2931_v35, %v2930_v38  ;;  %v2938_v14 = vpack.c.bf16 %v2925_v37, %v2924_v41  ;;  %v2926_v44 = vld [vmem:[#allocation3 + $0x58] sm:$0xff]  ;;  %v2927_v15 = vld [vmem:[#allocation3 + $0xa8] sm:$0xff] }
 0x499   : > { %4021 = vmatprep.subr.bf16.mxu0 %v4301_v17  ;;  %4067 = vmatprep.subr.bf16.mxu1 %v4301_v17  ;;  %v2933_v9 = vld [vmem:[#allocation3 + $0x60] sm:$0xff]  ;;  %v2934_v19 = vld [vmem:[#allocation3 + $0x18] sm:$0xff]  ;;  %v2935_v26 = vld [vmem:[#allocation3 + $0x68] sm:$0xff]  ;;  %v2939_v18 = vpack.c.bf16 %v2927_v15, %v2926_v44 }
 0x49a   : > { %v2942_v42 = vpack.c.bf16 %v2933_v9, %v2932_v21  ;;  %v2943_v46 = vpack.c.bf16 %v2935_v26, %v2934_v19  ;;  %v3460_v49 = vld [vmem:[%s5210_s9] ss:$0 sm:$0xff] }
 0x49c   : > { %4022 = vmatpush3.bf16.msra.mxu0 %v4301_v17  ;;  %4075 = vmatpush3.bf16.msra.mxu1 %v4301_v17 }
 0x49d   : > { %4023 = vmatprep.subr.bf16.mxu0 %v4302_v39  ;;  %4068 = vmatprep.subr.bf16.mxu1 %v4302_v39 }
 0x4a0   : > { %4024 = vmatpush3.bf16.msra.mxu0 %v4302_v39  ;;  %4076 = vmatpush3.bf16.msra.mxu1 %v4302_v39 }
 0x4a1   : > { %4025 = vmatprep.subr.bf16.mxu0 %v4303_v47  ;;  %4069 = vmatprep.subr.bf16.mxu1 %v4303_v47 }
 0x4a4   : > { %4026 = vmatpush3.bf16.msra.mxu0 %v4303_v47  ;;  %4077 = vmatpush3.bf16.msra.mxu1 %v4303_v47 }
 0x4a5   : > { %4027 = vmatprep.subr.bf16.mxu0 %v4304_v23  ;;  %4070 = vmatprep.subr.bf16.mxu1 %v4304_v23 }
 0x4a8   : > { %4028 = vmatpush3.bf16.msra.mxu0 %v4304_v23  ;;  %4078 = vmatpush3.bf16.msra.mxu1 %v4304_v23 }
 0x4a9   : > { %4029 = vmatprep.subr.bf16.mxu0 %v4305_v24  ;;  %4071 = vmatprep.subr.bf16.mxu1 %v4305_v24 }
 0x4ac   : > { %4030 = vmatpush3.bf16.msra.mxu0 %v4305_v24  ;;  %4079 = vmatpush3.bf16.msra.mxu1 %v4305_v24 }
 0x4ad   : > { %4031 = vmatprep.subr.bf16.mxu0 %v4306_v36  ;;  %4072 = vmatprep.subr.bf16.mxu1 %v4306_v36 }
 0x4b0   : > { %4032 = vmatpush3.bf16.msra.mxu0 %v4306_v36  ;;  %4080 = vmatpush3.bf16.msra.mxu1 %v4306_v36 }
 0x4b3   : > { %4034 = vmatmul.mubr.bf16.vlgmr.msra.gmra.mxu0 %v2937_v34  ;;  %4042 = vmatmul.mubr.bf16.vlgmr.msra.gmra.mxu1 %v2941_v12 }
 0x4b4   : > { %4037 = vmatprep.mubr.bf16.mxu0 %v2938_v14  ;;  %4045 = vmatprep.mubr.bf16.mxu1 %v2942_v42 }
 0x4bb   : > { %4038 = vmatmul.mubr.bf16.gmra.mxu0 %v2939_v18  ;;  %4046 = vmatmul.mubr.bf16.gmra.mxu1 %v2943_v46 }
 0x573   : > { %v4035_v50 = vpop.f32.mrf.mxu0  ;;  %v4043_v51 = vpop.f32.mrf.mxu1 }
 0x574   : > { %v3058_v52 = vadd.f32 %v4035_v50, %v3460_v49  ;;  %v3090_v53 = vadd.f32 %v4043_v51, %v3460_v49 }
 0x575   : > { %v3049_v25 = vpop.f32.mrf.mxu0  ;;  %v3081_v27 = vpop.f32.mrf.mxu1 }
 0x576   : > { %3114 = vst [vmem:[#allocation15 + $0x10] sm:$0xff] %v3058_v52  ;;  %3122 = vst [vmem:[#allocation15 + $0x50] sm:$0xff] %v3090_v53  ;;  %v3050_v54 = vadd.f32 %v3460_v49, %v3049_v25  ;;  %v3082_v55 = vadd.f32 %v3460_v49, %v3081_v27 }
 0x577   : > { %v4036_v33 = vpop.f32.mrf.mxu0  ;;  %v4044_v56 = vpop.f32.mrf.mxu1 }
 0x578   : > { %3112 = vst [vmem:[#allocation15] sm:$0xff] %v3050_v54  ;;  %3120 = vst [vmem:[#allocation15 + $0x40] sm:$0xff] %v3082_v55  ;;  %v3061_v57 = vadd.f32 %v4036_v33, %v3460_v49  ;;  %v3093_v59 = vadd.f32 %v4044_v56, %v3460_v49 }
 0x579   : > { %v3052_v60 = vpop.f32.mrf.mxu0  ;;  %v3084_v62 = vpop.f32.mrf.mxu1 }
 0x57a   : > { %3115 = vst [vmem:[#allocation15 + $0x18] sm:$0xff] %v3061_v57  ;;  %3123 = vst [vmem:[#allocation15 + $0x58] sm:$0xff] %v3093_v59  ;;  %v3053_v1 = vadd.f32 %v3460_v49, %v3052_v60  ;;  %v3085_v45 = vadd.f32 %v3460_v49, %v3084_v62 }
 0x57b   : > { %v4039_v63 = vpop.f32.mrf.mxu0  ;;  %v4047_v40 = vpop.f32.mrf.mxu1 }
 0x57c   : > { %3113 = vst [vmem:[#allocation15 + $0x8] sm:$0xff] %v3053_v1  ;;  %3121 = vst [vmem:[#allocation15 + $0x48] sm:$0xff] %v3085_v45  ;;  %v3074_v0 = vadd.f32 %v4039_v63, %v3460_v49  ;;  %v3106_v58 = vadd.f32 %v4047_v40, %v3460_v49 }
 0x57d   : > { %v3065_v32 = vpop.f32.mrf.mxu0  ;;  %v3097_v3 = vpop.f32.mrf.mxu1 }
 0x57e   : > { %3118 = vst [vmem:[#allocation15 + $0x30] sm:$0xff] %v3074_v0  ;;  %3126 = vst [vmem:[#allocation15 + $0x70] sm:$0xff] %v3106_v58  ;;  %v3066_v2 = vadd.f32 %v3460_v49, %v3065_v32  ;;  %v3098_v4 = vadd.f32 %v3460_v49, %v3097_v3 }
 0x57f   : > { %v4040_v48 = vpop.f32.mrf.mxu0  ;;  %v4048_v6 = vpop.f32.mrf.mxu1 }
 0x580   : > { %3116 = vst [vmem:[#allocation15 + $0x20] sm:$0xff] %v3066_v2  ;;  %3124 = vst [vmem:[#allocation15 + $0x60] sm:$0xff] %v3098_v4  ;;  %v3077_v7 = vadd.f32 %v4040_v48, %v3460_v49  ;;  %v3109_v8 = vadd.f32 %v4048_v6, %v3460_v49 }
 0x581   : > { %v3068_v5 = vpop.f32.mrf.mxu0  ;;  %v3100_v10 = vpop.f32.mrf.mxu1 }
 0x582   : > { %3119 = vst [vmem:[#allocation15 + $0x38] sm:$0xff] %v3077_v7  ;;  %3127 = vst [vmem:[#allocation15 + $0x78] sm:$0xff] %v3109_v8  ;;  %v3069_v11 = vadd.f32 %v3460_v49, %v3068_v5  ;;  %v3101_v13 = vadd.f32 %v3460_v49, %v3100_v10 }
 0x584   : > { %3117 = vst [vmem:[#allocation15 + $0x28] sm:$0xff] %v3069_v11  ;;  %3125 = vst [vmem:[#allocation15 + $0x68] sm:$0xff] %v3101_v13 }
 0x585 PF: > { %p4149_p6 = scmp.eq.s32.totalorder %s4661_s17, 1  ;;  %s4584_s21 = smov [#allocation15]  }
 0x586   : > { %s3134_s12 = sshll.u32 %s4584_s21, 4  ;;  %s3135_s12 = int_to_ptr.vmem [resolvable:$true] %s3134_s12 }
 0x587   : > { %s4493_s0 = scalar_lea.vmem %s3135_s12, 2048  ;;  %p4500_p12 = scmp.lt.s32.totalorder %s3135_s12, %s3135_s12 }
 0x588   : > { %p4494_p0 = scmp.ne.s32.totalorder %s3135_s12, %s4493_s0  ;;  %p4501_p2 = scmp.lt.s32.totalorder %s4493_s0, %s4493_s0 }
 0x58a   : > { %p4495_p8 = pnand %p4494_p0, %p4149_p6  ;;  %p4502_p11 = por %p4501_p2, %p4500_p12 }
 0x58c   : > { %p4496_p10 = pneg %p4495_p8 }
 0x58e   : > { %p4503_p13 = pnand %p4502_p11, %p4496_p10 }
 0x590   : > { %4506 = shalt.err (!%p4503_p13)
}
 0x591   : > { %s4585_s1 = smov 128   ;;  %s4586_s19 = smov 8  }
 0x592   : > { %4112 = dma.vmem_to_hbm [thread:$0]  (%p4149_p6), %s3135_s12, 2048, %s5211_s10, [#allocation6], %s4585_s1, %s4585_s1, %s4586_s19  }
 0x593   : > { %4554 = dma.done.wait (%p4149_p6), [#allocation6], 2048  }
 0x594   : > { %4556 = vsyncadd (%p4149_p6), [#allocation6], 4294965248 }
 0x595 PF: > { %s5251_s20 = sld [smem:[#allocation22_spill]]  ;;  %p21_p7 = scmp.ge.s32.totalorder %s4710_s29, 4  }
 0x596   : > { %s5252_s13 = smov %s4563_s14  ;;  %s5253_s14 = smov %s4567_s15 }
 0x597   : > { %s5255_s16 = smov %s4710_s29  ;;  %23 = sbr.rel (!%p21_p7) target bundleno = 10 (0xa), region = 153 }
 0x59b   : > { %s5254_s15 = smov %s5251_s20 }
 0x59c   :  { %3150 = vsyncpa [#allocation5], 1 }
 0x59d   :  { %3152 = vsyncpa [#allocation5 + $0x1], 1 }
 0x59e   :  { %3153 = vsyncpa [#allocation8], 1 }
 0x59f   :  { %3154 = vsyncpa [#allocation11], 1 }
 0x5a0   :  { %3155 = vsyncpa [#allocation6], 1 }
 0x5a1   :  { %3157 = vsyncpa [#allocation6 + $0x1], 1 }

</bundles_post_ra>
